<compile_context>
chip_gen: v7x
topology: tpu7x:2x2x1
jax: 0.10.0
libtpu: 0.0.40
codegen_flags: <defaults>
</compile_context>

<pallas_src>
import functools

import jax
import jax.numpy as jnp
from jax.experimental import pallas as pl
from jax.experimental.pallas import tpu as pltpu


# --------------------------- shared step compute -----------------------------
def _lstm_stack_step(num_layers, rnn_size, wb_refs, prev_hs, prev_cs,
                     x0_parts=(), l0_precomp=None):
    """One time-step of the full LSTM stack.  One fused MXU dot per layer.

    x0_parts   : bf16 [TB, *] arrays concatenated in front of prev_h for layer 0
                 (single-step mode: [xt, img_fc]); empty in sequence mode.
    l0_precomp : optional f32 [TB, G0] precomputed input projection for layer 0
                 (sequence mode: hoisted xt/img_fc matmul).
    """
    R = rnn_size
    f32 = jnp.float32
    new_hs, new_cs = [], []
    fake = None
    x_bf = None
    for L in range(num_layers):                       # static unroll
        w_ref = wb_refs[2 * L]                        # bf16 weights (MXU operand)
        b_ref = wb_refs[2 * L + 1]                    # f32 pre-summed bias [1, G]
        prev_h = prev_hs[L]                           # f32 [TB, R]
        prev_c = prev_cs[L]                           # f32 [TB, R]
        prev_h_bf = prev_h.astype(w_ref.dtype)        # cast BEFORE concat
        if L == 0:
            parts = list(x0_parts) + [prev_h_bf]
        else:
            # TODO(synk): F.dropout(x, drop_prob_lm, training) -> identity (eval).
            parts = [x_bf, prev_h_bf]
        lhs = parts[0] if len(parts) == 1 else jnp.concatenate(parts, axis=1)
        sums = jnp.dot(lhs, w_ref[...], preferred_element_type=f32) + b_ref[...]
        if L == 0 and l0_precomp is not None:
            sums = sums + l0_precomp
        # per-gate sigmoid slices (no [TB, 3R] temporary)
        in_gate = jax.nn.sigmoid(sums[:, 0:R])
        forget_gate = jax.nn.sigmoid(sums[:, R:2 * R])
        out_gate = jax.nn.sigmoid(sums[:, 2 * R:3 * R])
        # use_maxout=True -> max over the last two gate chunks
        in_transform = jnp.maximum(sums[:, 3 * R:4 * R], sums[:, 4 * R:5 * R])
        next_c = forget_gate * prev_c + in_gate * in_transform
        tanh_c = jnp.tanh(next_c)
        next_h = out_gate * tanh_c
        if L == num_layers - 1:
            # fused r_* projection lives in columns [5R:6R]
            # TODO(synk): dropout on fake_region / top_h -> identity (eval mode).
            fake = jax.nn.sigmoid(sums[:, 5 * R:6 * R]) * tanh_c
        new_hs.append(next_h)
        new_cs.append(next_c)
        x_bf = next_h.astype(w_ref.dtype)
    return new_hs, new_cs, fake


# ------------------------------ kernels --------------------------------------
def _ada_att_lstm_step_kernel(num_layers, rnn_size, *refs):
    """Single-step cell (matches the PyTorch module's forward)."""
    xt_ref, fc_ref, h_in_ref, c_in_ref = refs[0:4]
    wb_refs = refs[4:4 + 2 * num_layers]
    fake_ref, h_out_ref, c_out_ref = refs[4 + 2 * num_layers:]

    wdt = wb_refs[0].dtype
    x0_parts = (xt_ref[...].astype(wdt), fc_ref[...].astype(wdt))
    prev_hs = [h_in_ref[L] for L in range(num_layers)]
    prev_cs = [c_in_ref[L] for L in range(num_layers)]

    new_hs, new_cs, fake = _lstm_stack_step(
        num_layers, rnn_size, wb_refs, prev_hs, prev_cs, x0_parts=x0_parts)

    for L in range(num_layers):
        h_out_ref[L] = new_hs[L]
        c_out_ref[L] = new_cs[L]
    fake_ref[...] = fake


def _ada_att_lstm_seq_kernel(num_layers, rnn_size, *refs):
    """Sequence mode: grid = (batch_tiles, T); state carried in resident outputs."""
    xproj_ref, h0_ref, c0_ref = refs[0:3]
    wb_refs = refs[3:3 + 2 * num_layers]
    toph_ref, fake_ref, h_out_ref, c_out_ref = refs[3 + 2 * num_layers:]

    t = pl.program_id(1)

    @pl.when(t == 0)
    def _():
        h_out_ref[...] = h0_ref[...]
        c_out_ref[...] = c0_ref[...]

    prev_hs = [h_out_ref[L] for L in range(num_layers)]
    prev_cs = [c_out_ref[L] for L in range(num_layers)]

    new_hs, new_cs, fake = _lstm_stack_step(
        num_layers, rnn_size, wb_refs, prev_hs, prev_cs,
        x0_parts=(), l0_precomp=xproj_ref[0])

    for L in range(num_layers):
        h_out_ref[L] = new_hs[L]
        c_out_ref[L] = new_cs[L]
    toph_ref[0] = new_hs[-1]
    fake_ref[0] = fake


# ------------------------------- wrappers ------------------------------------
def _pick_tile_b(B):
    if B <= 128:
        return B
    # tiles up to 256 rows (v6e MXU pass height), but keep >=2 grid steps so the
    # "parallel" batch axis can shard across v7x's two TensorCores.
    for cand in (256, 128, 64, 32, 16, 8):
        if B % cand == 0 and B // cand >= 2:
            return cand
    return B


_VMEM_LIMIT = 32 * 1024 * 1024   # raise v5e's 16 MiB default scoped-VMEM limit


def ada_att_lstm_forward(xt, img_fc, state, fused_wb, *, num_layers, rnn_size,
                         tile_b=None, donate_state=False):
    """Single-step forward (same semantics as the PyTorch module)."""
    h_in, c_in = state
    B, E = xt.shape
    R = rnn_size
    if tile_b is None:
        tile_b = _pick_tile_b(B)
    assert B % tile_b == 0, "batch must be a multiple of the batch tile"
    grid = (B // tile_b,)

    def act_spec(feat):
        return pl.BlockSpec((tile_b, feat), lambda b: (b, 0))

    state_spec = pl.BlockSpec((num_layers, tile_b, R), lambda b: (0, b, 0))

    args = [xt, img_fc, h_in, c_in]
    in_specs = [act_spec(E), act_spec(R), state_spec, state_spec]
    for (w, b) in fused_wb:
        args += [w, b]
        # constant block index -> weights/biases stay VMEM-resident across the grid
        in_specs += [pl.BlockSpec(w.shape, lambda b: (0, 0)),
                     pl.BlockSpec(b.shape, lambda b: (0, 0))]

    out_shape = (
        jax.ShapeDtypeStruct((B, R), jnp.float32),              # fake_region
        jax.ShapeDtypeStruct((num_layers, B, R), jnp.float32),  # new h stack
        jax.ShapeDtypeStruct((num_layers, B, R), jnp.float32),  # new c stack
    )
    out_specs = (act_spec(R), state_spec, state_spec)

    # donate h_in -> h_out, c_in -> c_out (in-place state update)
    io_aliases = {2: 1, 3: 2} if donate_state else {}

    kernel = functools.partial(_ada_att_lstm_step_kernel, num_layers, rnn_size)
    fake_region, h_out, c_out = pl.pallas_call(
        kernel,
        grid=grid,
        out_shape=out_shape,
        in_specs=in_specs,
        out_specs=out_specs,
        input_output_aliases=io_aliases,
        compiler_params=pltpu.CompilerParams(
            dimension_semantics=("parallel",),
            vmem_limit_bytes=_VMEM_LIMIT),
    )(*args)

    top_h = h_out[num_layers - 1]        # identical to the module's top_h
    return top_h, fake_region, (h_out, c_out)


def ada_att_lstm_sequence(xt_seq, img_fc, state0, fused_wb, *, num_layers,
                          rnn_size, tile_b=None, donate_state=False):
    """Step the cell over a [T, B, E] sequence in ONE pallas_call.

    Weights are DMA'd once (constant index_map over both grid axes) and the
    input-dependent half of layer 0 is hoisted out of the recurrence as one big
    MXU matmul, leaving only the K=R recurrent dot on the serial path.
    """
    h0, c0 = state0
    T, B, E = xt_seq.shape
    R = rnn_size
    if tile_b is None:
        tile_b = _pick_tile_b(B)
    assert B % tile_b == 0
    grid = (B // tile_b, T)   # batch tiles outer (parallel), time inner (sequential)

    # ---- hoist the input-dependent projection of layer 0 out of the recurrence
    w0, b0 = fused_wb[0]
    G0 = w0.shape[1]                      # 5R, or 6R if num_layers == 1
    w0_xt, w0_fc, w0_h = w0[:E], w0[E:E + R], w0[E + R:]
    xt_proj = jnp.dot(xt_seq.reshape(T * B, E).astype(w0.dtype), w0_xt,
                      preferred_element_type=jnp.float32)
    fc_proj = jnp.dot(img_fc.astype(w0.dtype), w0_fc,
                      preferred_element_type=jnp.float32)
    x_proj = xt_proj.reshape(T, B, G0) + fc_proj[None]          # f32 [T, B, G0]

    wb_seq = [(w0_h, b0)] + list(fused_wb[1:])

    state_spec = pl.BlockSpec((num_layers, tile_b, R), lambda b, t: (0, b, 0))
    seq_spec_g = pl.BlockSpec((1, tile_b, G0), lambda b, t: (t, b, 0))
    seq_spec_r = pl.BlockSpec((1, tile_b, R), lambda b, t: (t, b, 0))

    args = [x_proj, h0, c0]
    in_specs = [seq_spec_g, state_spec, state_spec]
    for (w, b) in wb_seq:
        args += [w, b]
        in_specs += [pl.BlockSpec(w.shape, lambda b, t: (0, 0)),
                     pl.BlockSpec(b.shape, lambda b, t: (0, 0))]

    out_shape = (
        jax.ShapeDtypeStruct((T, B, R), jnp.float32),             # top_h per step
        jax.ShapeDtypeStruct((T, B, R), jnp.float32),             # fake_region/step
        jax.ShapeDtypeStruct((num_layers, B, R), jnp.float32),    # final h
        jax.ShapeDtypeStruct((num_layers, B, R), jnp.float32),    # final c
    )
    out_specs = (seq_spec_r, seq_spec_r, state_spec, state_spec)

    io_aliases = {1: 2, 2: 3} if donate_state else {}

    kernel = functools.partial(_ada_att_lstm_seq_kernel, num_layers, rnn_size)
    toph_seq, fake_seq, h_fin, c_fin = pl.pallas_call(
        kernel,
        grid=grid,
        out_shape=out_shape,
        in_specs=in_specs,
        out_specs=out_specs,
        input_output_aliases=io_aliases,
        compiler_params=pltpu.CompilerParams(
            dimension_semantics=("parallel", "arbitrary"),
            vmem_limit_bytes=_VMEM_LIMIT),
    )(*args)
    return toph_seq, fake_seq, (h_fin, c_fin)


# ----------------------------- parameter init --------------------------------
def _linear(key, fan_in, fan_out):
    """PyTorch nn.Linear default init: U(-1/sqrt(fan_in), 1/sqrt(fan_in))."""
    kw, kb = jax.random.split(key)
    bound = 1.0 / jnp.sqrt(fan_in)
    w = jax.random.uniform(kw, (fan_in, fan_out), jnp.float32, -bound, bound)
    b = jax.random.uniform(kb, (1, fan_out), jnp.float32, -bound, bound)
    return w, b


def init_params(key, *, input_encoding_size, rnn_size, num_layers):
    """Original (un-fused, f32) parameter structure, mirroring the PyTorch module."""
    G = 5 * rnn_size  # (4 + use_maxout) * rnn_size, use_maxout=True
    keys = jax.random.split(key, 8 + 2 * num_layers)
    ki = iter(keys)
    p = {}
    p["w2h_w"], p["w2h_b"] = _linear(next(ki), input_encoding_size, G)
    p["v2h_w"], p["v2h_b"] = _linear(next(ki), rnn_size, G)
    if num_layers > 1:
        ws, bs = [], []
        for _ in range(num_layers - 1):
            w, b = _linear(next(ki), rnn_size, G)
            ws.append(w); bs.append(b)
        p["i2h_w"] = jnp.stack(ws)                 # [L-1, R, 5R]
        p["i2h_b"] = jnp.stack(bs)                 # [L-1, 1, 5R]
    ws, bs = [], []
    for _ in range(num_layers):
        w, b = _linear(next(ki), rnn_size, G)
        ws.append(w); bs.append(b)
    p["h2h_w"] = jnp.stack(ws)                     # [L, R, 5R]
    p["h2h_b"] = jnp.stack(bs)                     # [L, 1, 5R]
    if num_layers == 1:
        p["r_w2h_w"], p["r_w2h_b"] = _linear(next(ki), input_encoding_size, rnn_size)
        p["r_v2h_w"], p["r_v2h_b"] = _linear(next(ki), rnn_size, rnn_size)
    else:
        p["r_i2h_w"], p["r_i2h_b"] = _linear(next(ki), rnn_size, rnn_size)
    p["r_h2h_w"], p["r_h2h_b"] = _linear(next(ki), rnn_size, rnn_size)
    return p


def fuse_params(params, *, num_layers, rnn_size, weight_dtype=jnp.bfloat16):
    """Pre-stack weights along K, fold r_* columns into the top layer,
    pre-sum biases.  Returns [(w_L, b_L)] with w in `weight_dtype`, b in f32."""
    fused = []
    for L in range(num_layers):
        if L == 0:
            # LHS order: [xt, img_fc, prev_h]
            w = jnp.concatenate([params["w2h_w"], params["v2h_w"],
                                 params["h2h_w"][0]], axis=0)        # [E+2R, 5R]
            b = params["w2h_b"] + params["v2h_b"] + params["h2h_b"][0]
        else:
            # LHS order: [x, prev_h]
            w = jnp.concatenate([params["i2h_w"][L - 1],
                                 params["h2h_w"][L]], axis=0)        # [2R, 5R]
            b = params["i2h_b"][L - 1] + params["h2h_b"][L]
        if L == num_layers - 1:
            if num_layers == 1:
                rw = jnp.concatenate([params["r_w2h_w"], params["r_v2h_w"],
                                      params["r_h2h_w"]], axis=0)    # [E+2R, R]
                rb = params["r_w2h_b"] + params["r_v2h_b"] + params["r_h2h_b"]
            else:
                rw = jnp.concatenate([params["r_i2h_w"],
                                      params["r_h2h_w"]], axis=0)    # [2R, R]
                rb = params["r_i2h_b"] + params["r_h2h_b"]
            w = jnp.concatenate([w, rw], axis=1)                     # [Kin, 6R]
            b = jnp.concatenate([b, rb], axis=1)                     # [1,  6R]
        fused.append((w.astype(weight_dtype), b.astype(jnp.float32)))
    return fused


# ------------------------------ JAX reference ---------------------------------
def ada_att_lstm_ref(xt, img_fc, state, params, *, num_layers, rnn_size):
    R = rnn_size
    h_in, c_in = state
    hs, cs = [], []
    fake_region = None
    for L in range(num_layers):
        prev_h, prev_c = h_in[L], c_in[L]
        if L == 0:
            x = xt
            i2h = (x @ params["w2h_w"] + params["w2h_b"]
                   + img_fc @ params["v2h_w"] + params["v2h_b"])
        else:
            x = hs[-1]
            i2h = x @ params["i2h_w"][L - 1] + params["i2h_b"][L - 1]
        s = i2h + prev_h @ params["h2h_w"][L] + params["h2h_b"][L]
        sig = jax.nn.sigmoid(s[:, :3 * R])
        ig, fg, og = sig[:, :R], sig[:, R:2 * R], sig[:, 2 * R:3 * R]
        it = jnp.maximum(s[:, 3 * R:4 * R], s[:, 4 * R:5 * R])
        nc = fg * prev_c + ig * it
        tc = jnp.tanh(nc)
        nh = og * tc
        if L == num_layers - 1:
            if num_layers == 1:
                ri = (x @ params["r_w2h_w"] + params["r_w2h_b"]
                      + img_fc @ params["r_v2h_w"] + params["r_v2h_b"])
            else:
                ri = x @ params["r_i2h_w"] + params["r_i2h_b"]
            n5 = ri + prev_h @ params["r_h2h_w"] + params["r_h2h_b"]
            fake_region = jax.nn.sigmoid(n5) * tc
        hs.append(nh); cs.append(nc)
    return hs[-1], fake_region, (jnp.stack(hs), jnp.stack(cs))


def ada_att_lstm_sequence_ref(xt_seq, img_fc, state, params, **kw):
    tophs, fakes = [], []
    for t in range(xt_seq.shape[0]):
        top_h, fake, state = ada_att_lstm_ref(xt_seq[t], img_fc, state, params, **kw)
        tophs.append(top_h); fakes.append(fake)
    return jnp.stack(tophs), jnp.stack(fakes), state


if __name__ == "__main__":
    # small shapes consistent with the module
    B = 8
    T = 4
    input_encoding_size = 128
    rnn_size = 128
    num_layers = 2

    key = jax.random.PRNGKey(0)
    kp, kx, kxs, kf, kh, kc = jax.random.split(key, 6)
    params = init_params(kp, input_encoding_size=input_encoding_size,
                         rnn_size=rnn_size, num_layers=num_layers)
    fused_wb = fuse_params(params, num_layers=num_layers, rnn_size=rnn_size,
                           weight_dtype=jnp.bfloat16)

    xt = jax.random.normal(kx, (B, input_encoding_size), jnp.float32)
    xt_seq = jax.random.normal(kxs, (T, B, input_encoding_size), jnp.float32)
    img_fc = jax.random.normal(kf, (B, rnn_size), jnp.float32)
    state = (jax.random.normal(kh, (num_layers, B, rnn_size), jnp.float32),
             jax.random.normal(kc, (num_layers, B, rnn_size), jnp.float32))

    # --- pure-JAX f32 references (computed first, before any buffer donation) ---
    r_top, r_fake, (r_h, r_c) = ada_att_lstm_ref(
        xt, img_fc, state, params, num_layers=num_layers, rnn_size=rnn_size)
    r_toph_seq, r_fake_seq, (r_hT, r_cT) = ada_att_lstm_sequence_ref(
        xt_seq, img_fc, state, params, num_layers=num_layers, rnn_size=rnn_size)

    # --- sequence kernel: weights DMA'd once, layer-0 input projection hoisted ---
    toph_seq, fake_seq, (hT, cT) = ada_att_lstm_sequence(
        xt_seq, img_fc, state, fused_wb, num_layers=num_layers, rnn_size=rnn_size)
    jax.block_until_ready((toph_seq, fake_seq, hT, cT))

    # --- single-step kernel (module semantics); donates state buffers ---
    top_h, fake_region, (h_new, c_new) = ada_att_lstm_forward(
        xt, img_fc, state, fused_wb, num_layers=num_layers, rnn_size=rnn_size,
        donate_state=True)
    jax.block_until_ready((top_h, fake_region, h_new, c_new))

    # tolerance loosened for bf16 MXU operands inside the kernels
    tol = dict(atol=5e-2, rtol=5e-2)
    assert jnp.allclose(top_h, r_top, **tol)
    assert jnp.allclose(fake_region, r_fake, **tol)
    assert jnp.allclose(h_new, r_h, **tol)
    assert jnp.allclose(c_new, r_c, **tol)
    assert jnp.allclose(toph_seq, r_toph_seq, **tol)
    assert jnp.allclose(fake_seq, r_fake_seq, **tol)
    assert jnp.allclose(hT, r_hT, **tol)
    assert jnp.allclose(cT, r_cT, **tol)

    print("KERNEL_OK")
</pallas_src>

<mosaic_0001>
module attributes {stable_mosaic.version = 11 : i64} {
  func.func @_ada_att_lstm_seq_kernel(%arg0: i32, %arg1: i32, %arg2: memref<1x8x640xf32, #tpu.memory_space<vmem>>, %arg3: memref<2x8x128xf32, #tpu.memory_space<vmem>>, %arg4: memref<2x8x128xf32, #tpu.memory_space<vmem>>, %arg5: memref<128x640xbf16, #tpu.memory_space<vmem>>, %arg6: memref<1x640xf32, #tpu.memory_space<vmem>>, %arg7: memref<256x768xbf16, #tpu.memory_space<vmem>>, %arg8: memref<1x768xf32, #tpu.memory_space<vmem>>, %arg9: memref<1x8x128xf32, #tpu.memory_space<vmem>>, %arg10: memref<1x8x128xf32, #tpu.memory_space<vmem>>, %arg11: memref<2x8x128xf32, #tpu.memory_space<vmem>>, %arg12: memref<2x8x128xf32, #tpu.memory_space<vmem>>) attributes {dimension_semantics = [#tpu.dimension_semantics<parallel>, #tpu.dimension_semantics<arbitrary>], iteration_bounds = array<i64: 1, 4>, scalar_prefetch = 0 : i64, scratch_operands = 0 : i64, tpu.core_type = #tpu.core_type<tc>, window_params = [{transform_indices = @transform_0, window_bounds = array<i64: 1, 8, 640>}, {transform_indices = @transform_1, window_bounds = array<i64: 2, 8, 128>}, {transform_indices = @transform_2, window_bounds = array<i64: 2, 8, 128>}, {pipeline_mode = #tpu.pipeline_mode<synchronous>, transform_indices = @transform_3, window_bounds = array<i64: 128, 640>}, {pipeline_mode = #tpu.pipeline_mode<synchronous>, transform_indices = @transform_4, window_bounds = array<i64: 1, 640>}, {pipeline_mode = #tpu.pipeline_mode<synchronous>, transform_indices = @transform_5, window_bounds = array<i64: 256, 768>}, {pipeline_mode = #tpu.pipeline_mode<synchronous>, transform_indices = @transform_6, window_bounds = array<i64: 1, 768>}, {transform_indices = @transform_7, window_bounds = array<i64: 1, 8, 128>}, {transform_indices = @transform_8, window_bounds = array<i64: 1, 8, 128>}, {transform_indices = @transform_9, window_bounds = array<i64: 2, 8, 128>}, {transform_indices = @transform_10, window_bounds = array<i64: 2, 8, 128>}]} {
    %c0_i32 = arith.constant 0 : i32
    %0 = arith.cmpi eq, %arg1, %c0_i32 : i32
    %1 = arith.extui %0 : i1 to i32
    %c0_i32_0 = arith.constant 0 : i32
    %2 = arith.cmpi ne, %1, %c0_i32_0 : i32
    scf.if %2 {
      %c0_48 = arith.constant 0 : index
      %c0_49 = arith.constant 0 : index
      %c0_50 = arith.constant 0 : index
      %105 = vector.load %arg3[%c0_48, %c0_49, %c0_50] : memref<2x8x128xf32, #tpu.memory_space<vmem>>, vector<2x8x128xf32>
      %c0_51 = arith.constant 0 : index
      %c0_52 = arith.constant 0 : index
      %c0_53 = arith.constant 0 : index
      %106 = vector.load %arg11[%c0_51, %c0_52, %c0_53] : memref<2x8x128xf32, #tpu.memory_space<vmem>>, vector<2x8x128xf32>
      tpu.vector_store %arg11[%c0_51, %c0_52, %c0_53], %105 {strides = array<i32>} : memref<2x8x128xf32, #tpu.memory_space<vmem>>, vector<2x8x128xf32>,
      %c0_54 = arith.constant 0 : index
      %c0_55 = arith.constant 0 : index
      %c0_56 = arith.constant 0 : index
      %107 = vector.load %arg4[%c0_54, %c0_55, %c0_56] : memref<2x8x128xf32, #tpu.memory_space<vmem>>, vector<2x8x128xf32>
      %c0_57 = arith.constant 0 : index
      %c0_58 = arith.constant 0 : index
      %c0_59 = arith.constant 0 : index
      %108 = vector.load %arg12[%c0_57, %c0_58, %c0_59] : memref<2x8x128xf32, #tpu.memory_space<vmem>>, vector<2x8x128xf32>
      tpu.vector_store %arg12[%c0_57, %c0_58, %c0_59], %107 {strides = array<i32>} : memref<2x8x128xf32, #tpu.memory_space<vmem>>, vector<2x8x128xf32>,
    } else {
    }
    %c0 = arith.constant 0 : index
    %c0_1 = arith.constant 0 : index
    %c0_2 = arith.constant 0 : index
    %3 = vector.load %arg11[%c0, %c0_1, %c0_2] : memref<2x8x128xf32, #tpu.memory_space<vmem>>, vector<1x8x128xf32>
    %4 = vector.shape_cast %3 : vector<1x8x128xf32> to vector<8x128xf32>
    %c1 = arith.constant 1 : index
    %c0_3 = arith.constant 0 : index
    %c0_4 = arith.constant 0 : index
    %5 = vector.load %arg11[%c1, %c0_3, %c0_4] : memref<2x8x128xf32, #tpu.memory_space<vmem>>, vector<1x8x128xf32>
    %6 = vector.shape_cast %5 : vector<1x8x128xf32> to vector<8x128xf32>
    %c0_5 = arith.constant 0 : index
    %c0_6 = arith.constant 0 : index
    %c0_7 = arith.constant 0 : index
    %7 = vector.load %arg12[%c0_5, %c0_6, %c0_7] : memref<2x8x128xf32, #tpu.memory_space<vmem>>, vector<1x8x128xf32>
    %8 = vector.shape_cast %7 : vector<1x8x128xf32> to vector<8x128xf32>
    %c1_8 = arith.constant 1 : index
    %c0_9 = arith.constant 0 : index
    %c0_10 = arith.constant 0 : index
    %9 = vector.load %arg12[%c1_8, %c0_9, %c0_10] : memref<2x8x128xf32, #tpu.memory_space<vmem>>, vector<1x8x128xf32>
    %10 = vector.shape_cast %9 : vector<1x8x128xf32> to vector<8x128xf32>
    %c0_11 = arith.constant 0 : index
    %c0_12 = arith.constant 0 : index
    %c0_13 = arith.constant 0 : index
    %11 = vector.load %arg2[%c0_11, %c0_12, %c0_13] : memref<1x8x640xf32, #tpu.memory_space<vmem>>, vector<1x8x640xf32>
    %12 = vector.shape_cast %11 : vector<1x8x640xf32> to vector<8x640xf32>
    %13 = arith.truncf %4 : vector<8x128xf32> to vector<8x128xbf16>
    %c0_14 = arith.constant 0 : index
    %c0_15 = arith.constant 0 : index
    %14 = vector.load %arg5[%c0_14, %c0_15] : memref<128x640xbf16, #tpu.memory_space<vmem>>, vector<128x640xbf16>
    %cst = arith.constant dense<0.000000e+00> : vector<8x640xf32>
    %15 = tpu.matmul %13, %14, %cst {dimension_numbers = #tpu.dot_dimension_numbers<[1], [0], [0], [1], [0, 0, 1, 1], [], []>} : vector<8x128xbf16>, vector<128x640xbf16>, vector<8x640xf32> -> vector<8x640xf32>
    %c0_16 = arith.constant 0 : index
    %c0_17 = arith.constant 0 : index
    %16 = vector.load %arg6[%c0_16, %c0_17] : memref<1x640xf32, #tpu.memory_space<vmem>>, vector<1x640xf32>
    %17 = vector.broadcast %16 : vector<1x640xf32> to vector<8x640xf32>
    %18 = arith.addf %15, %17 : vector<8x640xf32>
    %19 = arith.addf %18, %12 : vector<8x640xf32>
    %20 = vector.extract_strided_slice %19 {offsets = [0, 0], sizes = [8, 128], strides = [1, 1]} : vector<8x640xf32> to vector<8x128xf32>
    %21 = arith.negf %20 : vector<8x128xf32>
    %22 = math.exp %21 : vector<8x128xf32>
    %cst_18 = arith.constant 1.000000e+00 : f32
    %23 = vector.broadcast %cst_18 : f32 to vector<8x128xf32>
    %24 = arith.addf %23, %22 : vector<8x128xf32>
    %25 = arith.divf %23, %24 : vector<8x128xf32>
    %26 = vector.extract_strided_slice %19 {offsets = [0, 128], sizes = [8, 128], strides = [1, 1]} : vector<8x640xf32> to vector<8x128xf32>
    %27 = arith.negf %26 : vector<8x128xf32>
    %28 = math.exp %27 : vector<8x128xf32>
    %cst_19 = arith.constant 1.000000e+00 : f32
    %29 = vector.broadcast %cst_19 : f32 to vector<8x128xf32>
    %30 = arith.addf %29, %28 : vector<8x128xf32>
    %31 = arith.divf %29, %30 : vector<8x128xf32>
    %32 = vector.extract_strided_slice %19 {offsets = [0, 256], sizes = [8, 128], strides = [1, 1]} : vector<8x640xf32> to vector<8x128xf32>
    %33 = arith.negf %32 : vector<8x128xf32>
    %34 = math.exp %33 : vector<8x128xf32>
    %cst_20 = arith.constant 1.000000e+00 : f32
    %35 = vector.broadcast %cst_20 : f32 to vector<8x128xf32>
    %36 = arith.addf %35, %34 : vector<8x128xf32>
    %37 = arith.divf %35, %36 : vector<8x128xf32>
    %38 = vector.extract_strided_slice %19 {offsets = [0, 384], sizes = [8, 128], strides = [1, 1]} : vector<8x640xf32> to vector<8x128xf32>
    %39 = vector.extract_strided_slice %19 {offsets = [0, 512], sizes = [8, 128], strides = [1, 1]} : vector<8x640xf32> to vector<8x128xf32>
    %40 = arith.maximumf %38, %39 : vector<8x128xf32>
    %41 = arith.mulf %31, %8 : vector<8x128xf32>
    %42 = arith.mulf %25, %40 : vector<8x128xf32>
    %43 = arith.addf %41, %42 : vector<8x128xf32>
    %44 = math.tanh %43 : vector<8x128xf32>
    %45 = arith.mulf %37, %44 : vector<8x128xf32>
    %46 = arith.truncf %45 : vector<8x128xf32> to vector<8x128xbf16>
    %47 = arith.truncf %6 : vector<8x128xf32> to vector<8x128xbf16>
    %48 = tpu.concatenate %46, %47 in 1 : vector<8x128xbf16>, vector<8x128xbf16> -> vector<8x256xbf16>
    %c0_21 = arith.constant 0 : index
    %c0_22 = arith.constant 0 : index
    %49 = vector.load %arg7[%c0_21, %c0_22] : memref<256x768xbf16, #tpu.memory_space<vmem>>, vector<256x768xbf16>
    %cst_23 = arith.constant dense<0.000000e+00> : vector<8x768xf32>
    %50 = tpu.matmul %48, %49, %cst_23 {dimension_numbers = #tpu.dot_dimension_numbers<[1], [0], [0], [1], [0, 0, 1, 1], [], []>} : vector<8x256xbf16>, vector<256x768xbf16>, vector<8x768xf32> -> vector<8x768xf32>
    %c0_24 = arith.constant 0 : index
    %c0_25 = arith.constant 0 : index
    %51 = vector.load %arg8[%c0_24, %c0_25] : memref<1x768xf32, #tpu.memory_space<vmem>>, vector<1x768xf32>
    %52 = vector.broadcast %51 : vector<1x768xf32> to vector<8x768xf32>
    %53 = arith.addf %50, %52 : vector<8x768xf32>
    %54 = vector.extract_strided_slice %53 {offsets = [0, 0], sizes = [8, 128], strides = [1, 1]} : vector<8x768xf32> to vector<8x128xf32>
    %55 = arith.negf %54 : vector<8x128xf32>
    %56 = math.exp %55 : vector<8x128xf32>
    %cst_26 = arith.constant 1.000000e+00 : f32
    %57 = vector.broadcast %cst_26 : f32 to vector<8x128xf32>
    %58 = arith.addf %57, %56 : vector<8x128xf32>
    %59 = arith.divf %57, %58 : vector<8x128xf32>
    %60 = vector.extract_strided_slice %53 {offsets = [0, 128], sizes = [8, 128], strides = [1, 1]} : vector<8x768xf32> to vector<8x128xf32>
    %61 = arith.negf %60 : vector<8x128xf32>
    %62 = math.exp %61 : vector<8x128xf32>
    %cst_27 = arith.constant 1.000000e+00 : f32
    %63 = vector.broadcast %cst_27 : f32 to vector<8x128xf32>
    %64 = arith.addf %63, %62 : vector<8x128xf32>
    %65 = arith.divf %63, %64 : vector<8x128xf32>
    %66 = vector.extract_strided_slice %53 {offsets = [0, 256], sizes = [8, 128], strides = [1, 1]} : vector<8x768xf32> to vector<8x128xf32>
    %67 = arith.negf %66 : vector<8x128xf32>
    %68 = math.exp %67 : vector<8x128xf32>
    %cst_28 = arith.constant 1.000000e+00 : f32
    %69 = vector.broadcast %cst_28 : f32 to vector<8x128xf32>
    %70 = arith.addf %69, %68 : vector<8x128xf32>
    %71 = arith.divf %69, %70 : vector<8x128xf32>
    %72 = vector.extract_strided_slice %53 {offsets = [0, 384], sizes = [8, 128], strides = [1, 1]} : vector<8x768xf32> to vector<8x128xf32>
    %73 = vector.extract_strided_slice %53 {offsets = [0, 512], sizes = [8, 128], strides = [1, 1]} : vector<8x768xf32> to vector<8x128xf32>
    %74 = arith.maximumf %72, %73 : vector<8x128xf32>
    %75 = arith.mulf %65, %10 : vector<8x128xf32>
    %76 = arith.mulf %59, %74 : vector<8x128xf32>
    %77 = arith.addf %75, %76 : vector<8x128xf32>
    %78 = math.tanh %77 : vector<8x128xf32>
    %79 = arith.mulf %71, %78 : vector<8x128xf32>
    %80 = vector.extract_strided_slice %53 {offsets = [0, 640], sizes = [8, 128], strides = [1, 1]} : vector<8x768xf32> to vector<8x128xf32>
    %81 = arith.negf %80 : vector<8x128xf32>
    %82 = math.exp %81 : vector<8x128xf32>
    %cst_29 = arith.constant 1.000000e+00 : f32
    %83 = vector.broadcast %cst_29 : f32 to vector<8x128xf32>
    %84 = arith.addf %83, %82 : vector<8x128xf32>
    %85 = arith.divf %83, %84 : vector<8x128xf32>
    %86 = arith.mulf %85, %78 : vector<8x128xf32>
    %c0_30 = arith.constant 0 : index
    %c0_31 = arith.constant 0 : index
    %c0_32 = arith.constant 0 : index
    %87 = vector.load %arg11[%c0_30, %c0_31, %c0_32] : memref<2x8x128xf32, #tpu.memory_space<vmem>>, vector<1x8x128xf32>
    %88 = vector.shape_cast %87 : vector<1x8x128xf32> to vector<8x128xf32>
    %89 = vector.shape_cast %45 : vector<8x128xf32> to vector<1x8x128xf32>
    tpu.vector_store %arg11[%c0_30, %c0_31, %c0_32], %89 {strides = array<i32>} : memref<2x8x128xf32, #tpu.memory_space<vmem>>, vector<1x8x128xf32>,
    %c0_33 = arith.constant 0 : index
    %c0_34 = arith.constant 0 : index
    %c0_35 = arith.constant 0 : index
    %90 = vector.load %arg12[%c0_33, %c0_34, %c0_35] : memref<2x8x128xf32, #tpu.memory_space<vmem>>, vector<1x8x128xf32>
    %91 = vector.shape_cast %90 : vector<1x8x128xf32> to vector<8x128xf32>
    %92 = vector.shape_cast %43 : vector<8x128xf32> to vector<1x8x128xf32>
    tpu.vector_store %arg12[%c0_33, %c0_34, %c0_35], %92 {strides = array<i32>} : memref<2x8x128xf32, #tpu.memory_space<vmem>>, vector<1x8x128xf32>,
    %c1_36 = arith.constant 1 : index
    %c0_37 = arith.constant 0 : index
    %c0_38 = arith.constant 0 : index
    %93 = vector.load %arg11[%c1_36, %c0_37, %c0_38] : memref<2x8x128xf32, #tpu.memory_space<vmem>>, vector<1x8x128xf32>
    %94 = vector.shape_cast %93 : vector<1x8x128xf32> to vector<8x128xf32>
    %95 = vector.shape_cast %79 : vector<8x128xf32> to vector<1x8x128xf32>
    tpu.vector_store %arg11[%c1_36, %c0_37, %c0_38], %95 {strides = array<i32>} : memref<2x8x128xf32, #tpu.memory_space<vmem>>, vector<1x8x128xf32>,
    %c1_39 = arith.constant 1 : index
    %c0_40 = arith.constant 0 : index
    %c0_41 = arith.constant 0 : index
    %96 = vector.load %arg12[%c1_39, %c0_40, %c0_41] : memref<2x8x128xf32, #tpu.memory_space<vmem>>, vector<1x8x128xf32>
    %97 = vector.shape_cast %96 : vector<1x8x128xf32> to vector<8x128xf32>
    %98 = vector.shape_cast %77 : vector<8x128xf32> to vector<1x8x128xf32>
    tpu.vector_store %arg12[%c1_39, %c0_40, %c0_41], %98 {strides = array<i32>} : memref<2x8x128xf32, #tpu.memory_space<vmem>>, vector<1x8x128xf32>,
    %c0_42 = arith.constant 0 : index
    %c0_43 = arith.constant 0 : index
    %c0_44 = arith.constant 0 : index
    %99 = vector.load %arg9[%c0_42, %c0_43, %c0_44] : memref<1x8x128xf32, #tpu.memory_space<vmem>>, vector<1x8x128xf32>
    %100 = vector.shape_cast %99 : vector<1x8x128xf32> to vector<8x128xf32>
    %101 = vector.shape_cast %79 : vector<8x128xf32> to vector<1x8x128xf32>
    tpu.vector_store %arg9[%c0_42, %c0_43, %c0_44], %101 {strides = array<i32>} : memref<1x8x128xf32, #tpu.memory_space<vmem>>, vector<1x8x128xf32>,
    %c0_45 = arith.constant 0 : index
    %c0_46 = arith.constant 0 : index
    %c0_47 = arith.constant 0 : index
    %102 = vector.load %arg10[%c0_45, %c0_46, %c0_47] : memref<1x8x128xf32, #tpu.memory_space<vmem>>, vector<1x8x128xf32>
    %103 = vector.shape_cast %102 : vector<1x8x128xf32> to vector<8x128xf32>
    %104 = vector.shape_cast %86 : vector<8x128xf32> to vector<1x8x128xf32>
    tpu.vector_store %arg10[%c0_45, %c0_46, %c0_47], %104 {strides = array<i32>} : memref<1x8x128xf32, #tpu.memory_space<vmem>>, vector<1x8x128xf32>,
    return
  }
  func.func @transform_0(%arg0: i32, %arg1: i32) -> (i32, i32, i32) {
    %c0_i32 = arith.constant 0 : i32
    %c0_i32_0 = arith.constant 0 : i32
    return %arg1, %arg0, %c0_i32 : i32, i32, i32
  }
  func.func @transform_1(%arg0: i32, %arg1: i32) -> (i32, i32, i32) {
    %c0_i32 = arith.constant 0 : i32
    %c0_i32_0 = arith.constant 0 : i32
    %c0_i32_1 = arith.constant 0 : i32
    return %c0_i32, %arg0, %c0_i32_0 : i32, i32, i32
  }
  func.func @transform_2(%arg0: i32, %arg1: i32) -> (i32, i32, i32) {
    %c0_i32 = arith.constant 0 : i32
    %c0_i32_0 = arith.constant 0 : i32
    %c0_i32_1 = arith.constant 0 : i32
    return %c0_i32, %arg0, %c0_i32_0 : i32, i32, i32
  }
  func.func @transform_3(%arg0: i32, %arg1: i32) -> (i32, i32) {
    %c0_i32 = arith.constant 0 : i32
    %c0_i32_0 = arith.constant 0 : i32
    %c0_i32_1 = arith.constant 0 : i32
    return %c0_i32, %c0_i32_0 : i32, i32
  }
  func.func @transform_4(%arg0: i32, %arg1: i32) -> (i32, i32) {
    %c0_i32 = arith.constant 0 : i32
    %c0_i32_0 = arith.constant 0 : i32
    %c0_i32_1 = arith.constant 0 : i32
    return %c0_i32, %c0_i32_0 : i32, i32
  }
  func.func @transform_5(%arg0: i32, %arg1: i32) -> (i32, i32) {
    %c0_i32 = arith.constant 0 : i32
    %c0_i32_0 = arith.constant 0 : i32
    %c0_i32_1 = arith.constant 0 : i32
    return %c0_i32, %c0_i32_0 : i32, i32
  }
  func.func @transform_6(%arg0: i32, %arg1: i32) -> (i32, i32) {
    %c0_i32 = arith.constant 0 : i32
    %c0_i32_0 = arith.constant 0 : i32
    %c0_i32_1 = arith.constant 0 : i32
    return %c0_i32, %c0_i32_0 : i32, i32
  }
  func.func @transform_7(%arg0: i32, %arg1: i32) -> (i32, i32, i32) {
    %c0_i32 = arith.constant 0 : i32
    %c0_i32_0 = arith.constant 0 : i32
    return %arg1, %arg0, %c0_i32 : i32, i32, i32
  }
  func.func @transform_8(%arg0: i32, %arg1: i32) -> (i32, i32, i32) {
    %c0_i32 = arith.constant 0 : i32
    %c0_i32_0 = arith.constant 0 : i32
    return %arg1, %arg0, %c0_i32 : i32, i32, i32
  }
  func.func @transform_9(%arg0: i32, %arg1: i32) -> (i32, i32, i32) {
    %c0_i32 = arith.constant 0 : i32
    %c0_i32_0 = arith.constant 0 : i32
    %c0_i32_1 = arith.constant 0 : i32
    return %c0_i32, %arg0, %c0_i32_0 : i32, i32, i32
  }
  func.func @transform_10(%arg0: i32, %arg1: i32) -> (i32, i32, i32) {
    %c0_i32 = arith.constant 0 : i32
    %c0_i32_0 = arith.constant 0 : i32
    %c0_i32_1 = arith.constant 0 : i32
    return %c0_i32, %arg0, %c0_i32_0 : i32, i32, i32
  }
}

</mosaic_0001>

<bundles_post_ra>
// kernel: tpu_custom_call.1
= control target key start
LH: loop header
LB: loop body
LE: loop exit
PB: predicated region body
PF: predicated region fallthrough
CT: control target
= control target key end

     0   :  { %s3376_s0 = inlined_call_operand.hbm [shape: f32[4,8,640], index: 0, kind: input, shape index: {}]   ;;  %s3377_s1 = inlined_call_operand.hbm [shape: f32[2,8,128], index: 1, kind: input, shape index: {}]   ;;  %s3378_s2 = inlined_call_operand.hbm [shape: f32[2,8,128], index: 2, kind: input, shape index: {}]   ;;  %s3379_s3 = inlined_call_operand.hbm [shape: bf16[128,640], index: 3, kind: input, shape index: {}]   ;;  %s3380_s4 = inlined_call_operand.vmem [shape: f32[1,640], index: 4, kind: input, shape index: {}]   ;;  %s3381_s5 = inlined_call_operand.hbm [shape: bf16[256,768], index: 5, kind: input, shape index: {}]   ;;  %s3382_s6 = inlined_call_operand.vmem [shape: f32[1,768], index: 6, kind: input, shape index: {}]   ;;  %s3383_s7 = inlined_call_operand.hbm [shape: f32[4,8,128], index: 7, kind: output, shape index: {0}]   ;;  %s3384_s8 = inlined_call_operand.hbm [shape: f32[4,8,128], index: 8, kind: output, shape index: {1}]   ;;  %s3385_s9 = inlined_call_operand.hbm [shape: f32[2,8,128], index: 9, kind: output, shape index: {2}]   ;;  %s3386_s10 = inlined_call_operand.hbm [shape: f32[2,8,128], index: 10, kind: output, shape index: {3}]  }
   0x1   :  { %3398 = sst [smem:[#allocation24_spill]] %s3377_s1 }
   0x2   :  { %3399 = sst [smem:[#allocation25_spill]] %s3378_s2 }
   0x3   :  { %3400 = sst [smem:[#allocation26_spill]] %s3379_s3 }
   0x4   :  { %3401 = sst [smem:[#allocation27_spill]] %s3383_s7 }
   0x5   :  { %3402 = sst [smem:[#allocation28_spill]] %s3384_s8 }
   0x6   :  { %3403 = sst [smem:[#allocation29_spill]] %s3385_s9 }
   0x7   :  { %16 = vsyncpa [#allocation3], 0 }
   0x8   :  { %18 = vsyncpa [#allocation3 + $0x1], 0 }
   0x9   :  { %19 = vsyncpa [#allocation6], 0 }
   0xa   :  { %20 = vsyncpa [#allocation9], 0 }
   0xb   :  { %21 = vsyncpa [#allocation4], 0 }
   0xc   :  { %23 = vsyncpa [#allocation4 + $0x1], 0 }
   0xd   :  { %24 = vsyncpa [#allocation13], 0 }
   0xe   :  { %26 = vsyncpa [#allocation13 + $0x1], 0 }
   0xf   :  { %27 = vsyncpa [#allocation16], 0  ;;  %s2927_s13 = smov 0   ;;  %s2929_s14 = smov 0  }
  0x10   :  { %s2931_s15 = smov 0   ;;  %s2933_s16 = smov 0  }
  0x11   :  { %s2935_s17 = smov 0   ;;  %s2937_s18 = smov 0  }
  0x12 LB: > { %s2958_s19 = sadd.s32 4294967295, %s2850_s18   ;;  %p1961_p0 = scmp.ge.s32.totalorder %s2850_s18, 1  ;;  %s2850_s18 = sphi %s2937_s18, %s33_s18   ;;  %s2846_s17 = sphi %s2935_s17, %s3444_s17   ;;  %s2842_s16 = sphi %s2933_s16, %s3443_s16   ;;  %s2838_s15 = sphi %s2931_s15, %s3442_s15   ;;  %s2834_s14 = sphi %s2929_s14, %s3441_s14   ;;  %s2830_s13 = sphi %s2927_s13, %s3440_s13  }
  0x13   : > { %p3387_p1 = scmp.eq.s32.totalorder %s2958_s19, 0  ;;  %p322_p2 = scmp.lt.s32.totalorder %s2850_s18, 5 }
  0x14   : > { %s2852_s21 = smov [#allocation5]   ;;  %s2853_s24 = smov [#allocation8]  }
  0x15   : > { %p2963_p3 = pnand %p1961_p0, %p322_p2  ;;  %s336_s22 = sshll.u32 %s2852_s21, 4  ;;  %s337_s22 = int_to_ptr.vmem [resolvable:$true] %s336_s22 }
  0x16   : > { %s364_s25 = sshll.u32 %s2853_s24, 4  ;;  %s3406_s1 = sld [smem:[#allocation24_spill]]  ;;  %s2975_s25 = int_to_ptr.vmem [resolvable:$true] %s364_s25 }
  0x17   : > { %s3404_s20 = scalar_select %p2963_p3, 1, 0 }
  0x18   : > { %p2191_p4 = pneg %p2963_p3 }
  0x1a   : > { %p2971_p5 = pnand %p2191_p4, %p3387_p1 }
  0x1c   : > { %s2526_s28 = scalar_lea.hbm %s3406_s1, 256  ;;  %p2985_p7 = pneg %p2971_p5 }
  0x1d   : > { %p2527_p6 = scmp.ne.s32.totalorder %s3406_s1, %s2526_s28  ;;  %p2533_p10 = scmp.lt.u32.totalorder %s2526_s28, %s3406_s1 }
  0x1f   : > { %p2529_p8 = pnand %p2985_p7, %p2527_p6 }
  0x21   : > { %p2530_p9 = pneg %p2529_p8 }
  0x23   : > { %p2535_p11 = pnand %p2533_p10, %p2530_p9 }
  0x25   : > { %2538 = shalt.err (!%p2535_p11)
}
  0x26   : > { %s2539_s24 = scalar_lea.vmem %s337_s22, 256  ;;  %p2547_p2 = scmp.lt.s32.totalorder %s337_s22, %s337_s22 }
  0x27   : > { %p2540_p12 = scmp.ne.s32.totalorder %s337_s22, %s2539_s24  ;;  %p2548_p4 = scmp.lt.s32.totalorder %s2539_s24, %s2539_s24 }
  0x29   : > { %p2542_p13 = pnand %p2540_p12, %p2985_p7  ;;  %p2549_p1 = por %p2548_p4, %p2547_p2 }
  0x2b   : > { %p2543_p0 = pneg %p2542_p13 }
  0x2d   : > { %p2550_p3 = pnand %p2549_p1, %p2543_p0 }
  0x2f   : > { %2553 = shalt.err (!%p2550_p3)
}
  0x30   : > { %s3392_s26 = smov 128   ;;  %s3393_s27 = smov 8  }
  0x31   : > { %2194 = dma.hbm_to_vmem [thread:$0]  (!%p2971_p5), %s3406_s1, 256, %s337_s22, [#allocation6], %s3392_s26, %s3392_s26, %s3393_s27  }
  0x32   : > { %s3408_s3 = sld [smem:[#allocation26_spill]] }
  0x38   : > { %s2554_s21 = scalar_lea.hbm %s3408_s3, 5120 }
  0x39   : > { %p2555_p1 = scmp.ne.s32.totalorder %s3408_s3, %s2554_s21  ;;  %p2561_p8 = scmp.lt.u32.totalorder %s2554_s21, %s3408_s3 }
  0x3b   : > { %p2557_p3 = pnand %p2555_p1, %p2985_p7 }
  0x3d   : > { %p2558_p6 = pneg %p2557_p3 }
  0x3f   : > { %p2563_p9 = pnand %p2561_p8, %p2558_p6 }
  0x41   : > { %2566 = shalt.err (!%p2563_p9)
}
  0x42   : > { %s2567_s22 = scalar_lea.vmem %s2975_s25, 5120  ;;  %p2575_p13 = scmp.lt.s32.totalorder %s2975_s25, %s2975_s25 }
  0x43   : > { %p2568_p10 = scmp.ne.s32.totalorder %s2975_s25, %s2567_s22  ;;  %p2576_p0 = scmp.lt.s32.totalorder %s2567_s22, %s2567_s22 }
  0x45   : > { %p2570_p11 = pnand %p2568_p10, %p2985_p7  ;;  %p2577_p2 = por %p2576_p0, %p2575_p13 }
  0x47   : > { %p2571_p12 = pneg %p2570_p11 }
  0x49   : > { %p2578_p4 = pnand %p2577_p2, %p2571_p12 }
  0x4b   : > { %2581 = shalt.err (!%p2578_p4)
}
  0x4c   : > { %s2856_s9 = smov 320   ;;  %s2857_s7 = smov 20  }
  0x4d   : > { %2200 = dma.hbm_to_vmem [thread:$0]  (!%p2971_p5), %s3408_s3, 5120, %s2975_s25, [#allocation9], %s2856_s9, %s2856_s9, %s2857_s7  }
  0x4e   : > { %s2858_s29 = smov [#allocation7]   ;;  %s2859_s12 = smov [#allocation10]  }
  0x4f   : > { %s351_s30 = sshll.u32 %s2858_s29, 4  ;;  %s380_s21 = sshll.u32 %s2859_s12, 4  ;;  %s352_s30 = int_to_ptr.vmem [resolvable:$true] %s351_s30  ;;  %s3027_s21 = int_to_ptr.vmem [resolvable:$true] %s380_s21 }
  0x50   : > { %s3409_s2 = sld [smem:[#allocation25_spill]] }
  0x56   : > { %s2582_s26 = scalar_lea.hbm %s3409_s2, 256 }
  0x57   : > { %p2583_p1 = scmp.ne.s32.totalorder %s3409_s2, %s2582_s26  ;;  %p2589_p8 = scmp.lt.u32.totalorder %s2582_s26, %s3409_s2 }
  0x59   : > { %p2585_p3 = pnand %p2583_p1, %p2985_p7 }
  0x5b   : > { %p2586_p6 = pneg %p2585_p3 }
  0x5d   : > { %p2591_p9 = pnand %p2589_p8, %p2586_p6 }
  0x5f   : > { %2594 = shalt.err (!%p2591_p9)
}
  0x60   : > { %s2595_s9 = scalar_lea.vmem %s352_s30, 256  ;;  %p2603_p13 = scmp.lt.s32.totalorder %s352_s30, %s352_s30 }
  0x61   : > { %p2596_p10 = scmp.ne.s32.totalorder %s352_s30, %s2595_s9  ;;  %p2604_p0 = scmp.lt.s32.totalorder %s2595_s9, %s2595_s9 }
  0x63   : > { %p2598_p11 = pnand %p2596_p10, %p2985_p7  ;;  %p2605_p2 = por %p2604_p0, %p2603_p13 }
  0x65   : > { %p2599_p12 = pneg %p2598_p11 }
  0x67   : > { %p2606_p4 = pnand %p2605_p2, %p2599_p12 }
  0x69   : > { %2609 = shalt.err (!%p2606_p4)
}
  0x6a   : > { %s3410_s1 = smov 8   ;;  %s3411_s27 = smov 128  }
  0x6b   : > { %2197 = dma.hbm_to_vmem [thread:$0]  (!%p2971_p5), %s3409_s2, 256, %s352_s30, [#allocation6], %s3411_s27, %s3411_s27, %s3410_s1  }
  0x6c   : > { %s2610_s12 = scalar_lea.hbm %s3381_s5, 12288 }
  0x6d   : > { %p2611_p1 = scmp.ne.s32.totalorder %s3381_s5, %s2610_s12  ;;  %p2617_p8 = scmp.lt.u32.totalorder %s2610_s12, %s3381_s5 }
  0x6f   : > { %p2613_p3 = pnand %p2611_p1, %p2985_p7 }
  0x71   : > { %p2614_p6 = pneg %p2613_p3 }
  0x73   : > { %p2619_p9 = pnand %p2617_p8, %p2614_p6 }
  0x75   : > { %2622 = shalt.err (!%p2619_p9)
}
  0x76   : > { %s2623_s30 = scalar_lea.vmem %s3027_s21, 12288  ;;  %p2631_p13 = scmp.lt.s32.totalorder %s3027_s21, %s3027_s21 }
  0x77   : > { %p2624_p10 = scmp.ne.s32.totalorder %s3027_s21, %s2623_s30  ;;  %p2632_p0 = scmp.lt.s32.totalorder %s2623_s30, %s2623_s30 }
  0x79   : > { %p2626_p11 = pnand %p2624_p10, %p2985_p7  ;;  %p2633_p2 = por %p2632_p0, %p2631_p13 }
  0x7b   : > { %p2627_p12 = pneg %p2626_p11 }
  0x7d   : > { %p2634_p4 = pnand %p2633_p2, %p2627_p12 }
  0x7f   : > { %2637 = shalt.err (!%p2634_p4)
}
  0x80   : > { %s2860_s9 = smov 384   ;;  %s2861_s11 = smov 24  }
  0x81   : > { %2203 = dma.hbm_to_vmem [thread:$0]  (!%p2971_p5), %s3381_s5, 12288, %s3027_s21, [#allocation9], %s2860_s9, %s2860_s9, %s2861_s11  }
  0x82   : > { %s3394_s7 = sadd.s32 4294967294, %s2850_s18   ;;  %s42_s26 = sadd.s32 1, %s2846_s17 }
  0x83   : > { %p43_p7 = scmp.ge.s32.totalorder %s42_s26, 4  ;;  %s54_s28 = sadd.s32 1, %s2838_s15 }
  0x84   : > { %p61_p1 = scmp.ne.s32.totalorder %s2838_s15, %s2834_s14  ;;  %p62_p3 = scmp.eq.s32.totalorder %s2850_s18, 0 }
  0x85   : > { %s3446_s26 = smov (%p43_p7, %s42_s26), 0  ;;  %p67_p8 = scmp.ne.s32.totalorder %s2834_s14, %s2830_s13 }
  0x86   : > { %p3081_p6 = por %p62_p3, %p61_p1  ;;  %s49_s21 = ssub.s32 %s2846_s17, %s3446_s26 }
  0x87   : > { %p3395_p5 = scmp.eq.s32.totalorder %s2958_s19, 3  ;;  %p52_p9 = scmp.eq.s32.totalorder %s49_s21, 0 }
  0x88   : > { %p3413_p10 = scmp.eq.s32.totalorder %s2958_s19, 0  ;;  %p235_p13 = scmp.eq.s32.totalorder %s3394_s7, 3 }
  0x89   : > { %p3098_p12 = por %p3395_p5, %p61_p1  ;;  %p2219_p2 = scmp.lt.s32.totalorder %s2850_s18, 4 }
  0x8a   : > { %p3092_p11 = por %p3413_p10, %p67_p8  ;;  %p3107_p0 = por %p235_p13, %p67_p8 }
  0x8b   : > { %s3415_s12 = scalar_select %p3098_p12, 1, 0 }
  0x8c   : > { %s3105_s24 = scalar_select %p52_p9, %s2838_s15, %s54_s28  }
  0x8d   : > { %s3416_s22 = scalar_select %p3107_p0, 1, 0 }
  0x8e   : > { %s397_s8 = sand.u32 1, %s2838_s15   ;;  %s2159_s25 = smul.u32 640, %s2846_s17 }
  0x8f   : > { %s2158_s30 = smul.u32 40, %s397_s8  ;;  %p3116_p4 = pnand %p2219_p2, %p3081_p6 }
  0x90   : > { %s3123_s27 = scalar_lea.hbm %s3376_s0, %s2159_s25  ;;  %s398_s23 = scalar_lea.sflag [#allocation3], %s397_s8 }
  0x91   : > { %s401_s28 = scalar_lea.vmem [#allocation2], %s2158_s30  ;;  %s2638_s7 = scalar_lea.hbm %s3123_s27, 640 }
  0x92   : > { %s411_s21 = sshll.u32 %s401_s28, 4  ;;  %p2639_p7 = scmp.ne.s32.totalorder %s3123_s27, %s2638_s7  ;;  %s3125_s21 = int_to_ptr.vmem [resolvable:$true] %s411_s21 }
  0x93   : > { %p2640_p1 = pneg %p3116_p4  ;;  %s2643_s1 = scalar_lea.hbm %s3376_s0, 2560 }
  0x94   : > { %p2644_p8 = scmp.lt.u32.totalorder %s3123_s27, %s3376_s0  ;;  %p2645_p9 = scmp.lt.u32.totalorder %s2643_s1, %s2638_s7 }
  0x95   : > { %p2641_p3 = pnand %p2640_p1, %p2639_p7  ;;  %p2647_p13 = scmp.lt.u32.totalorder %s2638_s7, %s3123_s27 }
  0x96   : > { %p2646_p10 = por %p2645_p9, %p2644_p8 }
  0x97   : > { %p2642_p6 = pneg %p2641_p3 }
  0x98   : > { %p2648_p2 = por %p2647_p13, %p2646_p10 }
  0x9a   : > { %p2649_p5 = pnand %p2648_p2, %p2642_p6 }
  0x9c   : > { %2652 = shalt.err (!%p2649_p5)
}
  0x9d   : > { %s2653_s8 = scalar_lea.vmem %s3125_s21, 640  ;;  %s2862_s30 = smov [#allocation2]  }
  0x9e   : > { %p2654_p7 = scmp.ne.s32.totalorder %s3125_s21, %s2653_s8  ;;  %s2658_s28 = sshll.u32 %s2862_s30, 4  ;;  %s2659_s28 = int_to_ptr.vmem [resolvable:$false] %s2658_s28 }
  0x9f   : > { %s2660_s2 = scalar_lea.vmem %s2659_s28, 1280  ;;  %p2661_p12 = scmp.lt.s32.totalorder %s3125_s21, %s2659_s28 }
  0xa0   : > { %p2656_p3 = pnand %p2654_p7, %p2640_p1  ;;  %p2662_p8 = scmp.lt.s32.totalorder %s2660_s2, %s2653_s8 }
  0xa2   : > { %p2657_p0 = pneg %p2656_p3  ;;  %p2663_p9 = por %p2662_p8, %p2661_p12 }
  0xa4   : > { %p2664_p10 = pnand %p2663_p9, %p2657_p0 }
  0xa6   : > { %2667 = shalt.err (!%p2664_p10)
}
  0xa7   : > { %2207 = dma.hbm_to_vmem [thread:$0]  (!%p3116_p4), %s3123_s27, 640, %s3125_s21, %s398_s23  }
  0xa8   : > { %p3418_p5 = scmp.ne.s32.totalorder %s3404_s20, 0 }
  0xa9   : > { %s3155_s3 = sand.u32 (!%p3418_p5), 1, %s2834_s14  }
  0xaa   : > { %420 = sbr.rel (%p3418_p5) target bundleno = 883 (0x373), region = 48  ;;  %s423_s11 = scalar_lea.sflag (!%p3418_p5), [#allocation3], %s3155_s3 }
  0xab   : > { %s2160_s7 = smul.u32 (!%p3418_p5), 40, %s3155_s3 }
  0xad   : > { %s3159_s25 = scalar_lea.vmem (!%p3418_p5), [#allocation2], %s2160_s7 }
  0xb1   : > { %2801 = dma.done.wait (%p3092_p11), %s423_s11, 640  }
  0xb2   : > { %2803 = vsyncadd (%p3092_p11), %s423_s11, 4294966656  ;;  %p3419_p12 = scmp.eq.s32.totalorder %s2958_s19, 0 }
  0xb4   : > { %2805 = dma.done.wait (%p3419_p12), [#allocation6], 512   ;;  %p3420_p0 = pmov %p3419_p12 }
  0xb6   : > { %2807 = vsyncadd (%p3420_p0), [#allocation6], 4294966784  ;;  %p3421_p4 = pmov %p3420_p0 }
  0xb7   : > { %p3422_p1 = pmov %p3420_p0 }
  0xb8   : > { %2809 = dma.done.wait (%p3421_p4), [#allocation9], 17408  }
  0xb9   : > { %2811 = vsyncadd (%p3422_p1), [#allocation9], 4294949888  ;;  %s1973_s20 = sshll.u32 %s3155_s3, 3  ;;  %p1975_p11 = scmp.ne.s32.totalorder %s2842_s16, 0 }
  0xba   : > { %s3174_s9 = scalar_lea.vmem [#allocation11], %s1973_s20  ;;  %s3176_s27 = scalar_lea.vmem [#allocation12], %s1973_s20  ;;  %v489_v0 = vld [vmem:[#allocation5] sm:$0xff] (!%p1975_p11)  ;;  %v490_v1 = vld [vmem:[#allocation5 + $0x8] sm:$0xff] (!%p1975_p11)  ;;  %v493_v2 = vld [vmem:[#allocation7] sm:$0xff] (!%p1975_p11) }
  0xbb   : > { %488 = sbr.rel (%p1975_p11) target bundleno = 194 (0xc2), region = 72  ;;  %491 = vst [vmem:[#allocation14] sm:$0xff] (!%p1975_p11), %v489_v0  ;;  %492 = vst [vmem:[#allocation14 + $0x8] sm:$0xff] (!%p1975_p11), %v490_v1  ;;  %v494_v3 = vld [vmem:[#allocation7 + $0x8] sm:$0xff] (!%p1975_p11) }
  0xbc   : > { %495 = vst [vmem:[#allocation15] sm:$0xff] (!%p1975_p11), %v493_v2  ;;  %496 = vst [vmem:[#allocation15 + $0x8] sm:$0xff] (!%p1975_p11), %v494_v3 }
  0xc2 PF: > { %v2294_v4 = vld [vmem:[#allocation8 + $0x4] ss:$20 sps:$4 sm:$0xff]   ;;  %v2296_v5 = vld [vmem:[#allocation8] ss:$20 sps:$4 sm:$0xff]   ;;  %v2863_v6 = vmov 0   ;;  %v2864_v38 = vmov 0.0  }
  0xc3   : > { %824 = vmatprep.mubr.bf16.mxu0 %v2863_v6  ;;  %865 = vmatprep.mubr.bf16.mxu1 %v2863_v6  ;;  %v2297_v7 = vld [vmem:[#allocation8 + $0x2c] ss:$20 sps:$4 sm:$0xff]   ;;  %v2299_v8 = vld [vmem:[#allocation8 + $0x28] ss:$20 sps:$4 sm:$0xff]   ;;  %v2302_v10 = vld [vmem:[#allocation8 + $0x50] ss:$20 sps:$4 sm:$0xff]  }
  0xc4   : > { %792 = vmatprep.subr.bf16.mxu0 %v2294_v4  ;;  %v2300_v9 = vld [vmem:[#allocation8 + $0x54] ss:$20 sps:$4 sm:$0xff]   ;;  %v2303_v11 = vld [vmem:[#allocation8 + $0x7c] ss:$20 sps:$4 sm:$0xff]   ;;  %v2311_v12 = vld [vmem:[#allocation8 + $0xc] ss:$20 sps:$4 sm:$0xff]  }
  0xc5   : > { %793 = vmatpush1.bf16.msra.mxu0 %v2296_v5  ;;  %v2314_v13 = vld [vmem:[#allocation8 + $0x8] ss:$20 sps:$4 sm:$0xff]   ;;  %833 = vmatprep.subr.bf16.mxu1 %v2311_v12  ;;  %v2305_v14 = vld [vmem:[#allocation8 + $0x78] ss:$20 sps:$4 sm:$0xff]   ;;  %v2320_v16 = vld [vmem:[#allocation8 + $0x30] ss:$20 sps:$4 sm:$0xff]  }
  0xc6   : > { %794 = vmatprep.subr.bf16.mxu0 %v2297_v7  ;;  %834 = vmatpush1.bf16.msra.mxu1 %v2314_v13  ;;  %v2317_v15 = vld [vmem:[#allocation8 + $0x34] ss:$20 sps:$4 sm:$0xff]   ;;  %v2306_v17 = vld [vmem:[#allocation8 + $0xa4] ss:$20 sps:$4 sm:$0xff]   ;;  %v2323_v18 = vld [vmem:[#allocation8 + $0x5c] ss:$20 sps:$4 sm:$0xff]  }
  0xc7   : > { %835 = vmatprep.subr.bf16.mxu1 %v2317_v15  ;;  %v2308_v19 = vld [vmem:[#allocation8 + $0xa0] ss:$20 sps:$4 sm:$0xff]   ;;  %v2326_v21 = vld [vmem:[#allocation8 + $0x58] ss:$20 sps:$4 sm:$0xff]   ;;  %v2313_v23 = vld [vmem:[#allocation8 + $0xc8] ss:$20 sps:$4 sm:$0xff]  }
  0xc8   : > { %v2309_v20 = vld [vmem:[#allocation8 + $0xcc] ss:$20 sps:$4 sm:$0xff]   ;;  %v2327_v22 = vld [vmem:[#allocation8 + $0x84] ss:$20 sps:$4 sm:$0xff]   ;;  %v2315_v25 = vld [vmem:[#allocation8 + $0xf4] ss:$20 sps:$4 sm:$0xff]  }
  0xc9   : > { %795 = vmatpush1.bf16.msra.mxu0 %v2299_v8  ;;  %v2329_v24 = vld [vmem:[#allocation8 + $0x80] ss:$20 sps:$4 sm:$0xff]   ;;  %v2319_v27 = vld [vmem:[#allocation8 + $0xf0] ss:$20 sps:$4 sm:$0xff]   ;;  %v2333_v29 = vld [vmem:[#allocation8 + $0xa8] ss:$20 sps:$4 sm:$0xff]  }
  0xca   : > { %796 = vmatprep.subr.bf16.mxu0 %v2300_v9  ;;  %836 = vmatpush1.bf16.msra.mxu1 %v2320_v16  ;;  %v2331_v26 = vld [vmem:[#allocation8 + $0xac] ss:$20 sps:$4 sm:$0xff]   ;;  %v2321_v28 = vld [vmem:[#allocation8 + $0x11c] ss:$20 sps:$4 sm:$0xff]   ;;  %v2335_v30 = vld [vmem:[#allocation8 + $0xd4] ss:$20 sps:$4 sm:$0xff]  }
  0xcb   : > { %837 = vmatprep.subr.bf16.mxu1 %v2323_v18  ;;  %v2325_v31 = vld [vmem:[#allocation8 + $0x118] ss:$20 sps:$4 sm:$0xff]   ;;  %v497_v32 = vld [vmem:[#allocation14] sm:$0xff]  ;;  %v2339_v34 = vld [vmem:[#allocation8 + $0xfc] ss:$20 sps:$4 sm:$0xff]   ;;  %vm2865_vm0 = vmmov 0  }
  0xcc   : > { %v2337_v33 = vld [vmem:[#allocation8 + $0xd0] ss:$20 sps:$4 sm:$0xff]   ;;  %v508_v35 = vpack.c.bf16 %v497_v32, %v497_v32  ;;  %v2341_v37 = vld [vmem:[#allocation8 + $0xf8] ss:$20 sps:$4 sm:$0xff]   ;;  %v2345_v41 = vld [vmem:[#allocation8 + $0x120] ss:$20 sps:$4 sm:$0xff]  }
  0xcd   : > { %797 = vmatpush1.bf16.msra.mxu0 %v2302_v10  ;;  %v2330_v36 = vld [vmem:[#allocation8 + $0x10] ss:$20 sps:$4 sm:$0xff]   ;;  %v2334_v40 = vld [vmem:[#allocation8 + $0x38] ss:$20 sps:$4 sm:$0xff]   ;;  %v2338_v43 = vld [vmem:[#allocation8 + $0x60] ss:$20 sps:$4 sm:$0xff]  }
  0xce   : > { %798 = vmatprep.subr.bf16.mxu0 %v2303_v11  ;;  %838 = vmatpush1.bf16.msra.mxu1 %v2326_v21  ;;  %v2343_v39 = vld [vmem:[#allocation8 + $0x124] ss:$20 sps:$4 sm:$0xff]   ;;  %v2358_v45 = vld [vmem:[#allocation10 + $0x34] ss:$24 sps:$4 sm:$0xff]   ;;  %v2342_v46 = vld [vmem:[#allocation8 + $0x88] ss:$20 sps:$4 sm:$0xff]  }
  0xcf   : > { %839 = vmatprep.subr.bf16.mxu1 %v2327_v22  ;;  %v2352_v42 = vld [vmem:[#allocation10 + $0x4] ss:$24 sps:$4 sm:$0xff]   ;;  %v2350_v44 = vld [vmem:[#allocation10] ss:$24 sps:$4 sm:$0xff]   ;;  %v2356_v47 = vld [vmem:[#allocation10 + $0x30] ss:$24 sps:$4 sm:$0xff]  }
  0xd0   : > { %v2346_v48 = vld [vmem:[#allocation8 + $0xb0] ss:$20 sps:$4 sm:$0xff]   ;;  %v2347_v49 = vld [vmem:[#allocation8 + $0xd8] ss:$20 sps:$4 sm:$0xff]   ;;  %v2348_v50 = vld [vmem:[#allocation8 + $0x100] ss:$20 sps:$4 sm:$0xff]  }
  0xd1   : > { %799 = vmatpush1.bf16.msra.mxu0 %v2305_v14  ;;  %v2349_v51 = vld [vmem:[#allocation8 + $0x128] ss:$20 sps:$4 sm:$0xff]   ;;  %v2355_v52 = vld [vmem:[#allocation10 + $0xc] ss:$24 sps:$4 sm:$0xff]   ;;  %v2359_v55 = vld [vmem:[#allocation10 + $0x38] ss:$24 sps:$4 sm:$0xff]  }
  0xd2   : > { %800 = vmatprep.subr.bf16.mxu0 %v2306_v17  ;;  %840 = vmatpush1.bf16.msra.mxu1 %v2329_v24  ;;  %v2353_v53 = vld [vmem:[#allocation10 + $0x8] ss:$24 sps:$4 sm:$0xff]   ;;  %v2361_v54 = vld [vmem:[#allocation10 + $0x3c] ss:$24 sps:$4 sm:$0xff]   ;;  %v2367_v58 = vld [vmem:[#allocation10 + $0x6c] ss:$24 sps:$4 sm:$0xff]  }
  0xd3   : > { %841 = vmatprep.subr.bf16.mxu1 %v2331_v26  ;;  %v2364_v56 = vld [vmem:[#allocation10 + $0x64] ss:$24 sps:$4 sm:$0xff]   ;;  %v2362_v57 = vld [vmem:[#allocation10 + $0x60] ss:$24 sps:$4 sm:$0xff]   ;;  %v2370_v60 = vld [vmem:[#allocation10 + $0x94] ss:$24 sps:$4 sm:$0xff]  }
  0xd4   : > { %v2365_v59 = vld [vmem:[#allocation10 + $0x68] ss:$24 sps:$4 sm:$0xff]   ;;  %v2373_v62 = vld [vmem:[#allocation10 + $0x9c] ss:$24 sps:$4 sm:$0xff]   ;;  %v2371_v63 = vld [vmem:[#allocation10 + $0x98] ss:$24 sps:$4 sm:$0xff]  }
  0xd5   : > { %801 = vmatpush1.bf16.msra.mxu0 %v2308_v19  ;;  %v2368_v61 = vld [vmem:[#allocation10 + $0x90] ss:$24 sps:$4 sm:$0xff]   ;;  %v2376_v0 = vld [vmem:[#allocation10 + $0xc4] ss:$24 sps:$4 sm:$0xff]   ;;  %v2374_v1 = vld [vmem:[#allocation10 + $0xc0] ss:$24 sps:$4 sm:$0xff]  }
  0xd6   : > { %802 = vmatprep.subr.bf16.mxu0 %v2309_v20  ;;  %842 = vmatpush1.bf16.msra.mxu1 %v2333_v29  ;;  %v2379_v2 = vld [vmem:[#allocation10 + $0xcc] ss:$24 sps:$4 sm:$0xff]   ;;  %v2377_v3 = vld [vmem:[#allocation10 + $0xc8] ss:$24 sps:$4 sm:$0xff]   ;;  %v2385_v6 = vld [vmem:[#allocation10 + $0xfc] ss:$24 sps:$4 sm:$0xff]  }
  0xd7   : > { %843 = vmatprep.subr.bf16.mxu1 %v2335_v30  ;;  %v2382_v4 = vld [vmem:[#allocation10 + $0xf4] ss:$24 sps:$4 sm:$0xff]   ;;  %v2380_v5 = vld [vmem:[#allocation10 + $0xf0] ss:$24 sps:$4 sm:$0xff]   ;;  %v2388_v8 = vld [vmem:[#allocation10 + $0x124] ss:$24 sps:$4 sm:$0xff]  }
  0xd8   : > { %v2383_v7 = vld [vmem:[#allocation10 + $0xf8] ss:$24 sps:$4 sm:$0xff]   ;;  %v2391_v10 = vld [vmem:[#allocation10 + $0x12c] ss:$24 sps:$4 sm:$0xff]   ;;  %v2389_v11 = vld [vmem:[#allocation10 + $0x128] ss:$24 sps:$4 sm:$0xff]  }
  0xd9   : > { %803 = vmatpush1.bf16.msra.mxu0 %v2313_v23  ;;  %v2386_v9 = vld [vmem:[#allocation10 + $0x120] ss:$24 sps:$4 sm:$0xff]   ;;  %v2394_v12 = vld [vmem:[#allocation10 + $0x154] ss:$24 sps:$4 sm:$0xff]   ;;  %v2392_v13 = vld [vmem:[#allocation10 + $0x150] ss:$24 sps:$4 sm:$0xff]  }
  0xda   : > { %804 = vmatprep.subr.bf16.mxu0 %v2315_v25  ;;  %844 = vmatpush1.bf16.msra.mxu1 %v2337_v33  ;;  %v2397_v14 = vld [vmem:[#allocation10 + $0x15c] ss:$24 sps:$4 sm:$0xff]   ;;  %v2395_v15 = vld [vmem:[#allocation10 + $0x158] ss:$24 sps:$4 sm:$0xff]   ;;  %v2403_v18 = vld [vmem:[#allocation10 + $0x18c] ss:$24 sps:$4 sm:$0xff]  }
  0xdb   : > { %845 = vmatprep.subr.bf16.mxu1 %v2339_v34  ;;  %v2400_v16 = vld [vmem:[#allocation10 + $0x184] ss:$24 sps:$4 sm:$0xff]   ;;  %v2398_v17 = vld [vmem:[#allocation10 + $0x180] ss:$24 sps:$4 sm:$0xff]   ;;  %v2406_v20 = vld [vmem:[#allocation10 + $0x1b4] ss:$24 sps:$4 sm:$0xff]  }
  0xdc   : > { %v2401_v19 = vld [vmem:[#allocation10 + $0x188] ss:$24 sps:$4 sm:$0xff]   ;;  %v2407_v22 = vld [vmem:[#allocation10 + $0x1b8] ss:$24 sps:$4 sm:$0xff]   ;;  %v2409_v23 = vld [vmem:[#allocation10 + $0x1bc] ss:$24 sps:$4 sm:$0xff]  }
  0xdd   : > { %805 = vmatpush1.bf16.msra.mxu0 %v2319_v27  ;;  %v2404_v21 = vld [vmem:[#allocation10 + $0x1b0] ss:$24 sps:$4 sm:$0xff]   ;;  %v2412_v24 = vld [vmem:[#allocation10 + $0x1e4] ss:$24 sps:$4 sm:$0xff]   ;;  %v2410_v25 = vld [vmem:[#allocation10 + $0x1e0] ss:$24 sps:$4 sm:$0xff]  }
  0xde   : > { %806 = vmatprep.subr.bf16.mxu0 %v2321_v28  ;;  %846 = vmatpush1.bf16.msra.mxu1 %v2341_v37  ;;  %v2415_v26 = vld [vmem:[#allocation10 + $0x1ec] ss:$24 sps:$4 sm:$0xff]   ;;  %v2413_v27 = vld [vmem:[#allocation10 + $0x1e8] ss:$24 sps:$4 sm:$0xff]   ;;  %v2421_v30 = vld [vmem:[#allocation10 + $0x21c] ss:$24 sps:$4 sm:$0xff]  }
  0xdf   : > { %847 = vmatprep.subr.bf16.mxu1 %v2343_v39  ;;  %v2418_v28 = vld [vmem:[#allocation10 + $0x214] ss:$24 sps:$4 sm:$0xff]   ;;  %v2416_v29 = vld [vmem:[#allocation10 + $0x210] ss:$24 sps:$4 sm:$0xff]   ;;  %v2424_v32 = vld [vmem:[#allocation10 + $0x244] ss:$24 sps:$4 sm:$0xff]  }
  0xe0   : > { %v2422_v33 = vld [vmem:[#allocation10 + $0x240] ss:$24 sps:$4 sm:$0xff]   ;;  %v2427_v34 = vld [vmem:[#allocation10 + $0x24c] ss:$24 sps:$4 sm:$0xff]   ;;  %v2433_v39 = vld [vmem:[#allocation10 + $0x27c] ss:$24 sps:$4 sm:$0xff]  }
  0xe1   : > { %807 = vmatpush1.bf16.msra.mxu0 %v2325_v31  ;;  %v2419_v31 = vld [vmem:[#allocation10 + $0x218] ss:$24 sps:$4 sm:$0xff]   ;;  %v2430_v37 = vld [vmem:[#allocation10 + $0x274] ss:$24 sps:$4 sm:$0xff]   ;;  %s2866_s8 = smov [#allocation15]   ;;  %p3423_p13 = scmp.eq.s32.totalorder %s2958_s19, 3 }
  0xe2   : > { %2138 = vmatprep.subr.bf16.mxu0 %v2864_v38  ;;  %848 = vmatpush1.bf16.msra.mxu1 %v2345_v41  ;;  %v2439_v41 = vld [vmem:[#allocation10 + $0x2ac] ss:$24 sps:$4 sm:$0xff]   ;;  %s1774_s30 = sshll.u32 %s2866_s8, 4  ;;  %s1775_s30 = int_to_ptr.vmem [resolvable:$true] %s1774_s30 }
  0xe3   : > { %1553 = vmatprep.subr.bf16.mxu1 %v2352_v42  ;;  %v2434_v42 = vld [vmem:[#allocation10 + $0x2a0] ss:$24 sps:$4 sm:$0xff]   ;;  %s2668_s28 = scalar_lea.vmem %s1775_s30, 256  ;;  %p2675_p3 = scmp.lt.s32.totalorder %s1775_s30, %s1775_s30 }
  0xe4   : > { %825 = vmatmul.mubr.bf16.vlgmr.msra.gmra.mrb[0].mxu0 %v508_v35  ;;  %p2669_p6 = scmp.ne.s32.totalorder %s1775_s30, %s2668_s28  ;;  %p2676_p8 = scmp.lt.s32.totalorder %s2668_s28, %s2668_s28 }
  0xe5   : > { %2139 = vmatpush3.bf16.msra.mxu0 %v2330_v36  ;;  %2154 = vmatprep.mubr.msk.bf16.mxu0 %vm2865_vm0, %v2864_v38  ;;  %v2428_v36 = vld [vmem:[#allocation10 + $0x270] ss:$24 sps:$4 sm:$0xff]  }
  0xe6   : > { %2140 = vmatprep.subr.bf16.mxu0 %v2864_v38  ;;  %866 = vmatmul.mubr.bf16.vlgmr.msra.gmra.mrb[0].mxu1 %v508_v35  ;;  %p2670_p2 = pnand %p2669_p6, %p3423_p13  ;;  %p2677_p9 = por %p2676_p8, %p2675_p3 }
  0xe7   : > { %1554 = vmatpush1.bf16.msra.mxu1 %v2350_v44  ;;  %v2442_v44 = vld [vmem:[#allocation10 + $0x2d4] ss:$24 sps:$4 sm:$0xff]  }
  0xe8   : > { %1555 = vmatprep.subr.bf16.mxu1 %v2358_v45  ;;  %v499_v45 = vld [vmem:[#allocation14 + $0x8] sm:$0xff]  ;;  %p2671_p7 = pneg %p2670_p2 }
  0xe9   : > { %2141 = vmatpush3.bf16.msra.mxu0 %v2334_v40  ;;  %v2436_v40 = vld [vmem:[#allocation10 + $0x2a4] ss:$24 sps:$4 sm:$0xff]  }
  0xea   : > { %2142 = vmatprep.subr.bf16.mxu0 %v2864_v38  ;;  %p2678_p10 = pnand %p2677_p9, %p2671_p7 }
  0xeb   : > { %1556 = vmatpush1.bf16.msra.mxu1 %v2356_v47  ;;  %v3179_v47 = vpack.c.bf16 %v499_v45, %v499_v45 }
  0xec   : > { %1557 = vmatprep.subr.bf16.mxu1 %v2364_v56 }
  0xed   : > { %2143 = vmatpush3.bf16.msra.mxu0 %v2338_v43  ;;  %v2437_v43 = vld [vmem:[#allocation10 + $0x2a8] ss:$24 sps:$4 sm:$0xff]   ;;  %1585 = vmatprep.mubr.bf16.mxu1 %v3179_v47 }
  0xee   : > { %2144 = vmatprep.subr.bf16.mxu0 %v2864_v38 }
  0xef   : > { %1558 = vmatpush1.bf16.msra.mxu1 %v2362_v57 }
  0xf0   : > { %1559 = vmatprep.subr.bf16.mxu1 %v2370_v60 }
  0xf1   : > { %2145 = vmatpush3.bf16.msra.mxu0 %v2342_v46  ;;  %v2445_v46 = vld [vmem:[#allocation10 + $0x2dc] ss:$24 sps:$4 sm:$0xff]  }
  0xf2   : > { %2146 = vmatprep.subr.bf16.mxu0 %v2864_v38 }
  0xf3   : > { %1560 = vmatpush1.bf16.msra.mxu1 %v2368_v61  ;;  %v504_v61 = vld [vmem:[%s3159_s25 + $0x8] sm:$0xff] }
  0xf4   : > { %1561 = vmatprep.subr.bf16.mxu1 %v2376_v0 }
  0xf5   : > { %2147 = vmatpush3.bf16.msra.mxu0 %v2346_v48  ;;  %v2440_v48 = vld [vmem:[#allocation10 + $0x2d0] ss:$24 sps:$4 sm:$0xff]  }
  0xf6   : > { %2148 = vmatprep.subr.bf16.mxu0 %v2864_v38 }
  0xf7   : > { %1562 = vmatpush1.bf16.msra.mxu1 %v2374_v1 }
  0xf8   : > { %1563 = vmatprep.subr.bf16.mxu1 %v2382_v4 }
  0xf9   : > { %2149 = vmatpush3.bf16.msra.mxu0 %v2347_v49  ;;  %v2443_v49 = vld [vmem:[#allocation10 + $0x2d8] ss:$24 sps:$4 sm:$0xff]  }
  0xfa   : > { %2150 = vmatprep.subr.bf16.mxu0 %v2864_v38 }
  0xfb   : > { %1564 = vmatpush1.bf16.msra.mxu1 %v2380_v5 }
  0xfc   : > { %1565 = vmatprep.subr.bf16.mxu1 %v2388_v8 }
  0xfd   : > { %2151 = vmatpush3.bf16.msra.mxu0 %v2348_v50  ;;  %v2448_v50 = vld [vmem:[#allocation10 + $0x14] ss:$24 sps:$4 sm:$0xff]  }
  0xfe   : > { %2152 = vmatprep.subr.bf16.mxu0 %v2864_v38  ;;  %v2431_v38 = vld [vmem:[#allocation10 + $0x278] ss:$24 sps:$4 sm:$0xff]  }
  0xff   : > { %1566 = vmatpush1.bf16.msra.mxu1 %v2386_v9 }
 0x100   : > { %1567 = vmatprep.subr.bf16.mxu1 %v2394_v12 }
 0x101   : > { %2153 = vmatpush3.bf16.msra.mxu0 %v2349_v51  ;;  %v559_v51 = vlaneseq }
 0x102   : > { %1594 = vmatprep.subr.bf16.mxu0 %v2355_v52 }
 0x103   : > { %1568 = vmatpush1.bf16.msra.mxu1 %v2392_v13  ;;  %v3183_v52 = vshrl.u32 %v559_v51, 7  ;;  %v505_v13 = vld [vmem:[%s3159_s25 + $0x10] sm:$0xff] }
 0x104   : > { %2155 = vmatmul.mubr.bf16.vlgmr.msra.gmra.mrb[4].mxu0 %v508_v35  ;;  %1569 = vmatprep.subr.bf16.mxu1 %v2400_v16  ;;  %v2425_v35 = vld [vmem:[#allocation10 + $0x248] ss:$24 sps:$4 sm:$0xff]   ;;  %v2454_v51 = vld [vmem:[#allocation10 + $0x74] ss:$24 sps:$4 sm:$0xff]  }
 0x105   : > { %1595 = vmatpush1.bf16.msra.mxu0 %v2353_v53  ;;  %1626 = vmatprep.mubr.bf16.mxu0 %v3179_v47  ;;  %v561_v53 = vsub.s32 0, %v3183_v52  ;;  %v569_v4 = vsub.s32 2, %v3183_v52 }
 0x106   : > { %1596 = vmatprep.subr.bf16.mxu0 %v2361_v54  ;;  %v557_v54 = vld [vmem:[%s3380_s4] sm:$0x1f] }
 0x107   : > { %1570 = vmatpush1.bf16.msra.mxu1 %v2398_v17  ;;  %v562_v56 = vrot.slane %v557_v54, %v561_v53 }
 0x108   : > { %1571 = vmatprep.subr.bf16.mxu1 %v2406_v20 }
 0x109   : > { %1597 = vmatpush1.bf16.msra.mxu0 %v2359_v55  ;;  %v565_v55 = vsub.s32 1, %v3183_v52 }
 0x10a   : > { %1598 = vmatprep.subr.bf16.mxu0 %v2367_v58  ;;  %v503_v58 = vld [vmem:[%s3159_s25] sm:$0xff] }
 0x10b   : > { %1572 = vmatpush1.bf16.msra.mxu1 %v2404_v21  ;;  %v566_v57 = vrot.slane %v557_v54, %v565_v55  ;;  %v577_v21 = vsub.s32 4, %v3183_v52 }
 0x10c   : > { %1573 = vmatprep.subr.bf16.mxu1 %v2412_v24 }
 0x10d   : > { %1599 = vmatpush1.bf16.msra.mxu0 %v2365_v59 }
 0x10e   : > { %1600 = vmatprep.subr.bf16.mxu0 %v2373_v62 }
 0x10f   : > { %1574 = vmatpush1.bf16.msra.mxu1 %v2410_v25  ;;  %v506_v25 = vld [vmem:[%s3159_s25 + $0x18] sm:$0xff] }
 0x110   : > { %1575 = vmatprep.subr.bf16.mxu1 %v2418_v28 }
 0x111   : > { %1601 = vmatpush1.bf16.msra.mxu0 %v2371_v63 }
 0x112   : > { %1602 = vmatprep.subr.bf16.mxu0 %v2379_v2 }
 0x113   : > { %1576 = vmatpush1.bf16.msra.mxu1 %v2416_v29 }
 0x114   : > { %1577 = vmatprep.subr.bf16.mxu1 %v2424_v32 }
 0x115   : > { %1603 = vmatpush1.bf16.msra.mxu0 %v2377_v3 }
 0x116   : > { %1604 = vmatprep.subr.bf16.mxu0 %v2385_v6 }
 0x117   : > { %1578 = vmatpush1.bf16.msra.mxu1 %v2422_v33 }
 0x118   : > { %1579 = vmatprep.subr.bf16.mxu1 %v2430_v37 }
 0x119   : > { %1605 = vmatpush1.bf16.msra.mxu0 %v2383_v7  ;;  %v570_v7 = vrot.slane %v557_v54, %v569_v4 }
 0x11a   : > { %1606 = vmatprep.subr.bf16.mxu0 %v2391_v10 }
 0x11b   : > { %1580 = vmatpush1.bf16.msra.mxu1 %v2428_v36  ;;  %v500_v36 = vld [vmem:[#allocation15] sm:$0xff] }
 0x11c   : > { %1581 = vmatprep.subr.bf16.mxu1 %v2436_v40 }
 0x11d   : > { %1607 = vmatpush1.bf16.msra.mxu0 %v2389_v11 }
 0x11e   : > { %1608 = vmatprep.subr.bf16.mxu0 %v2397_v14 }
 0x11f   : > { %1582 = vmatpush1.bf16.msra.mxu1 %v2434_v42 }
 0x120   : > { %1583 = vmatprep.subr.bf16.mxu1 %v2442_v44 }
 0x121   : > { %1609 = vmatpush1.bf16.msra.mxu0 %v2395_v15 }
 0x122   : > { %1610 = vmatprep.subr.bf16.mxu0 %v2403_v18 }
 0x123   : > { %1584 = vmatpush1.bf16.msra.mxu1 %v2440_v48 }
 0x124   : > { %1635 = vmatprep.subr.bf16.mxu1 %v2448_v50  ;;  %v2449_v50 = vld [vmem:[#allocation10 + $0x40] ss:$24 sps:$4 sm:$0xff]  }
 0x125   : > { %1611 = vmatpush1.bf16.msra.mxu0 %v2401_v19  ;;  %v573_v19 = vsub.s32 3, %v3183_v52 }
 0x126   : > { %1612 = vmatprep.subr.bf16.mxu0 %v2409_v23  ;;  %v578_v23 = vrot.slane %v557_v54, %v577_v21 }
 0x129   : > { %1613 = vmatpush1.bf16.msra.mxu0 %v2407_v22  ;;  %v574_v22 = vrot.slane %v557_v54, %v573_v19  ;;  %v2452_v54 = vld [vmem:[#allocation10 + $0x70] ss:$24 sps:$4 sm:$0xff]  }
 0x12a   : > { %1614 = vmatprep.subr.bf16.mxu0 %v2415_v26  ;;  %v507_v26 = vld [vmem:[%s3159_s25 + $0x20] sm:$0xff] }
 0x12d   : > { %1615 = vmatpush1.bf16.msra.mxu0 %v2413_v27 }
 0x12e   : > { %1616 = vmatprep.subr.bf16.mxu0 %v2421_v30 }
 0x131   : > { %1617 = vmatpush1.bf16.msra.mxu0 %v2419_v31 }
 0x132   : > { %1618 = vmatprep.subr.bf16.mxu0 %v2427_v34 }
 0x135   : > { %1619 = vmatpush1.bf16.msra.mxu0 %v2425_v35 }
 0x136   : > { %1620 = vmatprep.subr.bf16.mxu0 %v2433_v39 }
 0x139   : > { %1621 = vmatpush1.bf16.msra.mxu0 %v2431_v38 }
 0x13a   : > { %1622 = vmatprep.subr.bf16.mxu0 %v2439_v41 }
 0x13d   : > { %1623 = vmatpush1.bf16.msra.mxu0 %v2437_v43 }
 0x13e   : > { %1624 = vmatprep.subr.bf16.mxu0 %v2445_v46  ;;  %v2446_v46 = vld [vmem:[#allocation10 + $0x10] ss:$24 sps:$4 sm:$0xff]  }
 0x141   : > { %1625 = vmatpush1.bf16.msra.mxu0 %v2443_v49  ;;  %v2451_v49 = vld [vmem:[#allocation10 + $0x44] ss:$24 sps:$4 sm:$0xff]  }
 0x1b7   : > { %v826_v59 = vpop.f32.mrb[0].mxu0 }
 0x1b8   : > { %v827_v60 = vadd.f32 %v826_v59, %v562_v56  ;;  %v828_v62 = vpop.f32.mrb[1].mxu0  ;;  %v2457_v56 = vld [vmem:[#allocation10 + $0xa4] ss:$24 sps:$4 sm:$0xff]   ;;  %v2458_v59 = vld [vmem:[#allocation10 + $0xd0] ss:$24 sps:$4 sm:$0xff]  }
 0x1b9   : > { %v829_v63 = vadd.f32 %v828_v62, %v566_v57  ;;  %v830_v0 = vpop.f32.mrb[2].mxu0  ;;  %v867_v8 = vpop.f32.mrb[0].mxu1  ;;  %v2455_v57 = vld [vmem:[#allocation10 + $0xa0] ss:$24 sps:$4 sm:$0xff]   ;;  %v2466_v62 = vld [vmem:[#allocation10 + $0x134] ss:$24 sps:$4 sm:$0xff]  }
 0x1ba   : > { %v914_v1 = vadd.f32 %v827_v60, %v503_v58  ;;  %v831_v2 = vpop.f32.mrb[3].mxu0  ;;  %v869_v9 = vpop.f32.mrb[1].mxu1  ;;  %v868_v12 = vadd.f32 %v867_v8, %v570_v7  ;;  %v2460_v58 = vld [vmem:[#allocation10 + $0xd4] ss:$24 sps:$4 sm:$0xff]   ;;  %v2463_v60 = vld [vmem:[#allocation10 + $0x104] ss:$24 sps:$4 sm:$0xff]  }
 0x1bb   : > { %v915_v3 = vadd.f32 %v829_v63, %v504_v61  ;;  %v871_v10 = vpop.f32.mrb[2].mxu1  ;;  %v870_v24 = vadd.f32 %v869_v9, %v574_v22  ;;  %v2461_v61 = vld [vmem:[#allocation10 + $0x100] ss:$24 sps:$4 sm:$0xff]   ;;  %v2469_v63 = vld [vmem:[#allocation10 + $0x164] ss:$24 sps:$4 sm:$0xff]  }
 0x1bc   : > { %v2016_v6 = vmul.f32 -1.442695, %v914_v1  ;;  %v872_v11 = vpop.f32.mrb[3].mxu1  ;;  %v916_v14 = vadd.f32 %v868_v12, %v505_v13  ;;  %v2467_v0 = vld [vmem:[#allocation10 + $0x160] ss:$24 sps:$4 sm:$0xff]  }
 0x1bd   : > { %v2017_v5 = vmul.f32 -1.442695, %v915_v3  ;;  %v917_v32 = vadd.f32 %v870_v24, %v506_v25  ;;  %v2472_v1 = vld [vmem:[#allocation10 + $0x194] ss:$24 sps:$4 sm:$0xff]   ;;  %v2470_v2 = vld [vmem:[#allocation10 + $0x190] ss:$24 sps:$4 sm:$0xff]  }
 0x1be   : > { %v2018_v16 = vmul.f32 -1.442695, %v916_v14  ;;  %v2475_v3 = vld [vmem:[#allocation10 + $0x1c4] ss:$24 sps:$4 sm:$0xff]   ;;  %v2476_v7 = vld [vmem:[#allocation10 + $0x1f0] ss:$24 sps:$4 sm:$0xff]  }
 0x1bf   : > { %2494 = vpow2.f32 %v2017_v5  ;;  %v2473_v5 = vld [vmem:[#allocation10 + $0x1c0] ss:$24 sps:$4 sm:$0xff]   ;;  %v2481_v8 = vld [vmem:[#allocation10 + $0x224] ss:$24 sps:$4 sm:$0xff]   ;;  %v2484_v10 = vld [vmem:[#allocation10 + $0x254] ss:$24 sps:$4 sm:$0xff]  }
 0x1c0   : > { %2496 = vpow2.f32 %v2016_v6  ;;  %v2478_v6 = vld [vmem:[#allocation10 + $0x1f4] ss:$24 sps:$4 sm:$0xff]   ;;  %v2479_v9 = vld [vmem:[#allocation10 + $0x220] ss:$24 sps:$4 sm:$0xff]   ;;  %v2482_v11 = vld [vmem:[#allocation10 + $0x250] ss:$24 sps:$4 sm:$0xff]  }
 0x1c1   : > { %2498 = vpow2.f32 %v2018_v16  ;;  %v2487_v12 = vld [vmem:[#allocation10 + $0x284] ss:$24 sps:$4 sm:$0xff]   ;;  %v2485_v13 = vld [vmem:[#allocation10 + $0x280] ss:$24 sps:$4 sm:$0xff]   ;;  %v2490_v14 = vld [vmem:[#allocation10 + $0x2b4] ss:$24 sps:$4 sm:$0xff]  }
 0x1c2   : > { %v2493_v16 = vld [vmem:[#allocation10 + $0x2e4] ss:$24 sps:$4 sm:$0xff]  }
 0x1c9   : > { %v2495_v15 = vpop.eup %2494 }
 0x1ca   : > { %v2497_v17 = vpop.eup %2496  ;;  %v928_v18 = vadd.f32 1.0, %v2495_v15  ;;  %v2488_v15 = vld [vmem:[#allocation10 + $0x2b0] ss:$24 sps:$4 sm:$0xff]  }
 0x1cb   : > { %v922_v20 = vadd.f32 1.0, %v2497_v17  ;;  %v2499_v30 = vpop.eup %2498  ;;  %v2491_v17 = vld [vmem:[#allocation10 + $0x2e0] ss:$24 sps:$4 sm:$0xff]  }
 0x1cc   : > { %2500 = vrcp.f32 %v928_v18  ;;  %v934_v37 = vadd.f32 1.0, %v2499_v30 }
 0x1cd   : > { %2502 = vrcp.f32 %v922_v20 }
 0x1ce   : > { %2504 = vrcp.f32 %v934_v37 }
 0x1d6   : > { %v2501_v35 = vpop.eup %2500 }
 0x1d7   : > { %v908_v27 = vpop.f32.mrb[4].mxu0  ;;  %v2503_v39 = vpop.eup %2502  ;;  %v938_v40 = vmul.f32 %v2501_v35, %v500_v36 }
 0x1d8   : > { %v909_v28 = vadd.f32 %v908_v27, %v578_v23  ;;  %v2156_v29 = vpop.f32.mrb[5].mxu0  ;;  %v2505_v43 = vpop.eup %2504 }
 0x1d9   : > { %v911_v31 = vpop.f32.mrb[6].mxu0 }
 0x1da   : > { %v918_v33 = vadd.f32 %v909_v28, %v507_v26  ;;  %v2157_v34 = vpop.f32.mrb[7].mxu0  ;;  %v1041_v28 = vld [vmem:[%s3382_s6] sm:$0x3f] }
 0x1db   : > { %v1050_v29 = vrot.slane %v1041_v28, %v565_v55  ;;  %v1046_v30 = vrot.slane %v1041_v28, %v561_v53  ;;  %v1054_v35 = vrot.slane %v1041_v28, %v569_v4  ;;  %v1065_v53 = vsub.s32 5, %v3183_v52 }
 0x1dc   : > { %v937_v38 = vmax.f32 %v917_v32, %v918_v33  ;;  %v1058_v55 = vrot.slane %v1041_v28, %v573_v19 }
 0x1de   : > { %v939_v41 = vmul.f32 %v2503_v39, %v937_v38 }
 0x1e0   : > { %v940_v42 = vadd.f32 %v939_v41, %v938_v40 }
 0x1e2   : > { %2506 = vtanh.f32 %v940_v42  ;;  %1708 = vst [vmem:[#allocation15] sm:$0xff] %v940_v42  ;;  %v1062_v42 = vrot.slane %v1041_v28, %v577_v21 }
 0x1ec   : > { %v2507_v44 = vpop.eup %2506 }
 0x1ed   : > { %v942_v45 = vmul.f32 %v2507_v44, %v2505_v43  ;;  %v1066_v43 = vrot.slane %v1041_v28, %v1065_v53 }
 0x1ef   : > { %v3208_v48 = vpack.c.bf16 %v942_v45, %v942_v45  ;;  %1707 = vst [vmem:[#allocation14] sm:$0xff] %v942_v45 }
 0x1f1   : > { %1586 = vmatmul.mubr.bf16.vlgmr.msra.gmra.mrb[4].mxu1 %v3208_v48  ;;  %1627 = vmatmul.mubr.bf16.vlgmr.msra.gmra.mrb[8].mxu0 %v3208_v48 }
 0x1f2   : > { %1636 = vmatpush1.bf16.msra.mxu1 %v2446_v46  ;;  %1667 = vmatprep.mubr.bf16.mxu1 %v3179_v47  ;;  %v2464_v47 = vld [vmem:[#allocation10 + $0x130] ss:$24 sps:$4 sm:$0xff]  }
 0x1f3   : > { %1637 = vmatprep.subr.bf16.mxu1 %v2451_v49 }
 0x1f6   : > { %1638 = vmatpush1.bf16.msra.mxu1 %v2449_v50  ;;  %v502_v50 = vld [vmem:[#allocation15 + $0x8] sm:$0xff] }
 0x1f7   : > { %1639 = vmatprep.subr.bf16.mxu1 %v2454_v51 }
 0x1fa   : > { %1640 = vmatpush1.bf16.msra.mxu1 %v2452_v54 }
 0x1fb   : > { %1641 = vmatprep.subr.bf16.mxu1 %v2457_v56 }
 0x1fe   : > { %1642 = vmatpush1.bf16.msra.mxu1 %v2455_v57 }
 0x1ff   : > { %1643 = vmatprep.subr.bf16.mxu1 %v2460_v58 }
 0x202   : > { %1644 = vmatpush1.bf16.msra.mxu1 %v2458_v59 }
 0x203   : > { %1645 = vmatprep.subr.bf16.mxu1 %v2463_v60 }
 0x206   : > { %1646 = vmatpush1.bf16.msra.mxu1 %v2461_v61 }
 0x207   : > { %1647 = vmatprep.subr.bf16.mxu1 %v2466_v62 }
 0x20a   : > { %1648 = vmatpush1.bf16.msra.mxu1 %v2464_v47 }
 0x20b   : > { %1649 = vmatprep.subr.bf16.mxu1 %v2469_v63 }
 0x20e   : > { %1650 = vmatpush1.bf16.msra.mxu1 %v2467_v0 }
 0x20f   : > { %1651 = vmatprep.subr.bf16.mxu1 %v2472_v1 }
 0x212   : > { %1652 = vmatpush1.bf16.msra.mxu1 %v2470_v2 }
 0x213   : > { %1653 = vmatprep.subr.bf16.mxu1 %v2475_v3 }
 0x216   : > { %1654 = vmatpush1.bf16.msra.mxu1 %v2473_v5 }
 0x217   : > { %1655 = vmatprep.subr.bf16.mxu1 %v2478_v6 }
 0x21a   : > { %1656 = vmatpush1.bf16.msra.mxu1 %v2476_v7 }
 0x21b   : > { %1657 = vmatprep.subr.bf16.mxu1 %v2481_v8 }
 0x21e   : > { %1658 = vmatpush1.bf16.msra.mxu1 %v2479_v9 }
 0x21f   : > { %1659 = vmatprep.subr.bf16.mxu1 %v2484_v10 }
 0x222   : > { %1660 = vmatpush1.bf16.msra.mxu1 %v2482_v11 }
 0x223   : > { %1661 = vmatprep.subr.bf16.mxu1 %v2487_v12 }
 0x226   : > { %1662 = vmatpush1.bf16.msra.mxu1 %v2485_v13 }
 0x227   : > { %1663 = vmatprep.subr.bf16.mxu1 %v2490_v14 }
 0x22a   : > { %1664 = vmatpush1.bf16.msra.mxu1 %v2488_v15 }
 0x22b   : > { %1665 = vmatprep.subr.bf16.mxu1 %v2493_v16 }
 0x22e   : > { %1666 = vmatpush1.bf16.msra.mxu1 %v2491_v17 }
 0x231   : > { %1668 = vmatmul.mubr.bf16.vlgmr.msra.gmra.mrb[8].mxu1 %v3208_v48 }
 0x2c4   : > { %v1587_v18 = vpop.f32.mrb[4].mxu1  ;;  %v1628_v20 = vpop.f32.mrb[8].mxu0 }
 0x2c5   : > { %v1589_v22 = vpop.f32.mrb[5].mxu1  ;;  %v1630_v23 = vpop.f32.mrb[9].mxu0  ;;  %v1588_v32 = vadd.f32 %v1587_v18, %v1046_v30  ;;  %v1629_v36 = vadd.f32 %v1628_v20, %v1054_v35 }
 0x2c6   : > { %v1591_v24 = vpop.f32.mrb[6].mxu1  ;;  %v1632_v25 = vpop.f32.mrb[10].mxu0  ;;  %v1590_v31 = vadd.f32 %v1589_v22, %v1050_v29  ;;  %v1631_v45 = vadd.f32 %v1630_v23, %v1058_v55 }
 0x2c7   : > { %v1592_v26 = vpop.f32.mrb[7].mxu1  ;;  %v1633_v27 = vpop.f32.mrb[11].mxu0  ;;  %v2115_v34 = vmul.f32 -1.442695, %v1588_v32  ;;  %v2117_v39 = vmul.f32 -1.442695, %v1629_v36 }
 0x2c8   : > { %v2116_v33 = vmul.f32 -1.442695, %v1590_v31 }
 0x2ca   : > { %2508 = vpow2.f32 %v2116_v33 }
 0x2cb   : > { %2510 = vpow2.f32 %v2115_v34 }
 0x2cc   : > { %2512 = vpow2.f32 %v2117_v39 }
 0x2d4   : > { %v2509_v37 = vpop.eup %2508 }
 0x2d5   : > { %v2511_v38 = vpop.eup %2510  ;;  %v1685_v40 = vadd.f32 1.0, %v2509_v37 }
 0x2d6   : > { %v1679_v41 = vadd.f32 1.0, %v2511_v38  ;;  %v2513_v4 = vpop.eup %2512 }
 0x2d7   : > { %2514 = vrcp.f32 %v1685_v40  ;;  %v1691_v59 = vadd.f32 1.0, %v2513_v4 }
 0x2d8   : > { %2516 = vrcp.f32 %v1679_v41 }
 0x2e1   : > { %v2515_v49 = vpop.eup %2514 }
 0x2e2   : > { %v2517_v58 = vpop.eup %2516  ;;  %v1695_v52 = vmul.f32 %v2515_v49, %v502_v50 }
 0x304   : > { %v1669_v44 = vpop.f32.mrb[8].mxu1 }
 0x305   : > { %v1670_v46 = vadd.f32 %v1669_v44, %v1062_v42  ;;  %v1671_v48 = vpop.f32.mrb[9].mxu1 }
 0x306   : > { %v1672_v51 = vadd.f32 %v1671_v48, %v1066_v43  ;;  %v1673_v54 = vpop.f32.mrb[10].mxu1 }
 0x307   : > { %v1694_v56 = vmax.f32 %v1631_v45, %v1670_v46  ;;  %v1674_v57 = vpop.f32.mrb[11].mxu1 }
 0x308   : > { %v2118_v60 = vmul.f32 -1.442695, %v1672_v51 }
 0x309   : > { %v1696_v19 = vmul.f32 %v2517_v58, %v1694_v56 }
 0x30a   : > { %2518 = vpow2.f32 %v2118_v60 }
 0x30b   : > { %v1697_v21 = vadd.f32 %v1696_v19, %v1695_v52  ;;  %2520 = vrcp.f32 %v1691_v59 }
 0x30d   : > { %2522 = vtanh.f32 %v1697_v21  ;;  %1710 = vst [vmem:[#allocation15 + $0x8] sm:$0xff] %v1697_v21 }
 0x30e   : > { %2681 = shalt.err (!%p2678_p10)
}
 0x30f   : > { %s2682_s11 = scalar_lea.hbm %s3386_s10, 256  ;;  %p3424_p12 = pmov %p3423_p13 }
 0x310   : > { %p2683_p5 = scmp.ne.s32.totalorder %s3386_s10, %s2682_s11  ;;  %p2688_p1 = scmp.lt.u32.totalorder %s2682_s11, %s3386_s10 }
 0x312   : > { %p2684_p0 = pnand %p2683_p5, %p3424_p12 }
 0x314   : > { %p2685_p4 = pneg %p2684_p0 }
 0x316   : > { %p2690_p11 = pnand %p2688_p1, %p2685_p4 }
 0x318   : > { %2693 = shalt.err (!%p2690_p11)
}
 0x319   : > { %s3397_s23 = smov 128   ;;  %s2868_s1 = smov 8   ;;  %v2519_v61 = vpop.eup %2518 }
 0x31a   : > { %p3425_p6 = pmov %p3424_p12  ;;  %v1703_v62 = vadd.f32 1.0, %v2519_v61  ;;  %s2121_s2 = sshll.u32 %s2842_s16, 7  ;;  %v2521_v47 = vpop.eup %2520 }
 0x31b   : > { %s1733_s7 = sshll.u32 %s3174_s9, 4  ;;  %v2523_v63 = vpop.eup %2522  ;;  %s3426_s20 = sld [smem:[#allocation27_spill]]  ;;  %s3258_s7 = int_to_ptr.vmem [resolvable:$true] %s1733_s7 }
 0x31c   : > { %2184 = dma.vmem_to_hbm [thread:$0]  (%p3425_p6), %s1775_s30, 256, %s3386_s10, [#allocation16], %s3397_s23, %s3397_s23, %s2868_s1   ;;  %2524 = vrcp.f32 %v1703_v62  ;;  %v1699_v0 = vmul.f32 %v2523_v63, %v2521_v47 }
 0x31d   : > { %s1714_s30 = scalar_lea.sflag [#allocation4], %s3155_s3  ;;  %s2694_s21 = scalar_lea.vmem %s3258_s7, 128 }
 0x31e   : > { %1709 = vst [vmem:[#allocation14 + $0x8] sm:$0xff] %v1699_v0  ;;  %1711 = vst [vmem:[%s3174_s9] sm:$0xff] %v1699_v0  ;;  %p2695_p13 = scmp.ne.s32.totalorder %s3258_s7, %s2694_s21  ;;  %p3427_p2 = scmp.ne.s32.totalorder %s3415_s12, 0 }
 0x31f   : > { %s2869_s8 = smov [#allocation11]  }
 0x320   : > { %p2696_p7 = pnand %p2695_p13, %p3427_p2  ;;  %s2698_s28 = sshll.u32 %s2869_s8, 4  ;;  %s2699_s28 = int_to_ptr.vmem [resolvable:$false] %s2698_s28 }
 0x321   : > { %s3256_s29 = scalar_lea.hbm %s3426_s20, %s2121_s2  ;;  %s2700_s23 = scalar_lea.vmem %s2699_s28, 256 }
 0x322   : > { %p2697_p3 = pneg %p2696_p7  ;;  %p2701_p8 = scmp.lt.s32.totalorder %s3258_s7, %s2699_s28 }
 0x323   : > { %p2702_p9 = scmp.lt.s32.totalorder %s2700_s23, %s2694_s21 }
 0x325   : > { %p2703_p10 = por %p2702_p9, %p2701_p8 }
 0x327   : > { %p2704_p5 = pnand %p2703_p10, %p2697_p3 }
 0x329   : > { %2707 = shalt.err (!%p2704_p5)
}
 0x32a   : > { %s2708_s3 = scalar_lea.hbm %s3256_s29, 128  ;;  %s2712_s25 = scalar_lea.hbm %s3426_s20, 512 }
 0x32b   : > { %p2709_p12 = scmp.ne.s32.totalorder %s3256_s29, %s2708_s3  ;;  %p2713_p1 = scmp.lt.u32.totalorder %s3256_s29, %s3426_s20 }
 0x32c   : > { %p2714_p11 = scmp.lt.u32.totalorder %s2712_s25, %s2708_s3  ;;  %p2716_p13 = scmp.lt.u32.totalorder %s2708_s3, %s3256_s29 }
 0x32d   : > { %p2710_p0 = pnand %p2709_p12, %p3427_p2 }
 0x32e   : > { %p2715_p6 = por %p2714_p11, %p2713_p1 }
 0x32f   : > { %p2711_p4 = pneg %p2710_p0 }
 0x330   : > { %p2717_p7 = por %p2716_p13, %p2715_p6 }
 0x332   : > { %p2718_p3 = pnand %p2717_p7, %p2711_p4 }
 0x334   : > { %2721 = shalt.err (!%p2718_p3)
}
 0x335   : > { %2179 = dma.vmem_to_hbm [thread:$0]  (%p3427_p2), %s3258_s7, 128, %s3256_s29, %s1714_s30   ;;  %v2525_v1 = vpop.eup %2524 }
 0x336   : > { %s1718_s23 = sand.u32 1, %s2958_s19   ;;  %s1747_s21 = sshll.u32 %s3176_s27, 4  ;;  %v1706_v2 = vmul.f32 %v2525_v1, %v2523_v63  ;;  %s3292_s21 = int_to_ptr.vmem [resolvable:$true] %s1747_s21 }
 0x337   : > { %s2870_s9 = smov [#allocation14]   ;;  %s3428_s8 = sld [smem:[#allocation28_spill]] }
 0x338   : > { %s1759_s11 = sshll.u32 %s2870_s9, 4  ;;  %1712 = vst [vmem:[%s3176_s27] sm:$0xff] %v1706_v2  ;;  %s1719_s7 = scalar_lea.sflag [#allocation13], %s1718_s23  ;;  %s3294_s11 = int_to_ptr.vmem [resolvable:$true] %s1759_s11 }
 0x339   : > { %s2722_s29 = scalar_lea.vmem %s3292_s21, 128  ;;  %s2871_s16 = smov [#allocation12]  }
 0x33a   : > { %p2723_p8 = scmp.ne.s32.totalorder %s3292_s21, %s2722_s29  ;;  %s2726_s30 = sshll.u32 %s2871_s16, 4  ;;  %s2727_s30 = int_to_ptr.vmem [resolvable:$false] %s2726_s30 }
 0x33b   : > { %s2728_s9 = scalar_lea.vmem %s2727_s30, 256  ;;  %p2729_p5 = scmp.lt.s32.totalorder %s3292_s21, %s2727_s30 }
 0x33c   : > { %p2724_p9 = pnand %p2723_p8, %p3427_p2  ;;  %p2730_p12 = scmp.lt.s32.totalorder %s2728_s9, %s2722_s29 }
 0x33d   : > { %s3290_s28 = scalar_lea.hbm %s3428_s8, %s2121_s2 }
 0x33e   : > { %p2725_p10 = pneg %p2724_p9  ;;  %p2731_p0 = por %p2730_p12, %p2729_p5 }
 0x340   : > { %p2732_p4 = pnand %p2731_p0, %p2725_p10 }
 0x342   : > { %2735 = shalt.err (!%p2732_p4)
}
 0x343   : > { %s2736_s27 = scalar_lea.hbm %s3290_s28, 128  ;;  %s2740_s3 = scalar_lea.hbm %s3428_s8, 512 }
 0x344   : > { %p2737_p1 = scmp.ne.s32.totalorder %s3290_s28, %s2736_s27  ;;  %p2741_p13 = scmp.lt.u32.totalorder %s3290_s28, %s3428_s8 }
 0x345   : > { %p2742_p7 = scmp.lt.u32.totalorder %s2740_s3, %s2736_s27  ;;  %p2744_p8 = scmp.lt.u32.totalorder %s2736_s27, %s3290_s28 }
 0x346   : > { %p2738_p11 = pnand %p2737_p1, %p3427_p2 }
 0x347   : > { %p2743_p3 = por %p2742_p7, %p2741_p13 }
 0x348   : > { %p2739_p6 = pneg %p2738_p11 }
 0x349   : > { %p2745_p9 = por %p2744_p8, %p2743_p3 }
 0x34b   : > { %p2746_p10 = pnand %p2745_p9, %p2739_p6 }
 0x34d   : > { %2749 = shalt.err (!%p2746_p10)
}
 0x34e   : > { %2180 = dma.vmem_to_hbm [thread:$0]  (%p3427_p2), %s3292_s21, 128, %s3290_s28, %s1719_s7  }
 0x34f   : > { %s2750_s29 = scalar_lea.vmem %s3294_s11, 256  ;;  %p3429_p12 = scmp.eq.s32.totalorder %s2958_s19, 3 }
 0x350   : > { %p2751_p5 = scmp.ne.s32.totalorder %s3294_s11, %s2750_s29  ;;  %p2757_p1 = scmp.lt.s32.totalorder %s3294_s11, %s3294_s11 }
 0x351   : > { %p2758_p11 = scmp.lt.s32.totalorder %s2750_s29, %s2750_s29 }
 0x352   : > { %p2752_p0 = pnand %p2751_p5, %p3429_p12 }
 0x353   : > { %p2759_p13 = por %p2758_p11, %p2757_p1 }
 0x354   : > { %p2753_p4 = pneg %p2752_p0 }
 0x356   : > { %p2760_p6 = pnand %p2759_p13, %p2753_p4 }
 0x358   : > { %2763 = shalt.err (!%p2760_p6)
}
 0x359   : > { %s3430_s9 = sld [smem:[#allocation29_spill]]  ;;  %p3431_p7 = pmov %p3429_p12 }
 0x35f   : > { %s2764_s27 = scalar_lea.hbm %s3430_s9, 256 }
 0x360   : > { %p2765_p2 = scmp.ne.s32.totalorder %s3430_s9, %s2764_s27  ;;  %p2770_p9 = scmp.lt.u32.totalorder %s2764_s27, %s3430_s9 }
 0x362   : > { %p2766_p3 = pnand %p2765_p2, %p3431_p7 }
 0x364   : > { %p2767_p8 = pneg %p2766_p3 }
 0x366   : > { %p2772_p10 = pnand %p2770_p9, %p2767_p8 }
 0x368   : > { %2775 = shalt.err (!%p2772_p10)
}
 0x369   : > { %p3432_p5 = pmov %p3431_p7  ;;  %s3433_s7 = smov 128  }
 0x36b   : > { %2182 = dma.vmem_to_hbm [thread:$0]  (%p3432_p5), %s3294_s11, 256, %s3430_s9, [#allocation13], %s3433_s7, %s3433_s7, %s2868_s1  }
 0x36c   : > { %p3434_p12 = pmov %p3432_p5 }
 0x36d   : > { %p3435_p0 = pmov %p3432_p5 }
 0x36e   : > { %2813 = dma.done.wait (%p3434_p12), [#allocation13], 256  }
 0x36f   : > { %2815 = vsyncadd (%p3435_p0), [#allocation13], 4294967040  ;;  %p3436_p4 = pmov %p3435_p0 }
 0x370   : > { %p3437_p1 = pmov %p3435_p0 }
 0x371   : > { %2817 = dma.done.wait (%p3436_p4), [#allocation16], 256  }
 0x372   : > { %2819 = vsyncadd (%p3437_p1), [#allocation16], 4294967040 }
 0x373 PF: > { %p2228_p11 = scmp.ge.s32.totalorder %s2850_s18, 2  ;;  %s1797_s16 = sand.u32 1, %s2830_s13  }
 0x374   : > { %p3438_p13 = scmp.ne.s32.totalorder %s3416_s22, 0  ;;  %s1798_s1 = scalar_lea.sflag [#allocation4], %s1797_s16 }
 0x376   : > { %p2209_p6 = pnand %p2228_p11, %p3438_p13 }
 0x378   : > { %2821 = dma.done.wait (!%p2209_p6), %s1798_s1, 128  }
 0x379   : > { %2823 = vsyncadd (!%p2209_p6), %s1798_s1, 4294967168  ;;  %s3439_s11 = sadd.s32 4294967294, %s2850_s18  }
 0x37a   : > { %s1806_s29 = sand.u32 1, %s3439_s11  }
 0x37b   : > { %s1807_s30 = scalar_lea.sflag [#allocation13], %s1806_s29 }
 0x37c   : > { %2825 = dma.done.wait (!%p2209_p6), %s1807_s30, 128  }
 0x37d   : > { %2827 = vsyncadd (!%p2209_p6), %s1807_s30, 4294967168  ;;  %s33_s18 = sadd.s32 1, %s2850_s18   ;;  %s3440_s13 = smov %s2834_s14 }
 0x37e   : > { %p30_p2 = scmp.ge.s32.totalorder %s33_s18, 6   ;;  %s3441_s14 = smov %s2838_s15 }
 0x37f   : > { %s3442_s15 = smov %s3105_s24  ;;  %s3443_s16 = smov %s2846_s17 }
 0x380   : > { %s3444_s17 = smov %s3446_s26  ;;  %32 = sbr.rel (!%p30_p2) target bundleno = 18 (0x12), region = 152 }
 0x387   :  { %1812 = vsyncpa [#allocation3], 1 }
 0x388   :  { %1814 = vsyncpa [#allocation3 + $0x1], 1 }
 0x389   :  { %1815 = vsyncpa [#allocation6], 1 }
 0x38a   :  { %1816 = vsyncpa [#allocation9], 1 }
 0x38b   :  { %1817 = vsyncpa [#allocation4], 1 }
 0x38c   :  { %1819 = vsyncpa [#allocation4 + $0x1], 1 }
 0x38d   :  { %1820 = vsyncpa [#allocation13], 1 }
 0x38e   :  { %1822 = vsyncpa [#allocation13 + $0x1], 1 }
 0x38f   :  { %1823 = vsyncpa [#allocation16], 1 }

</bundles_post_ra>
